<compile_context>
chip_gen: v5e
topology: v5e:2x2
jax: 0.10.0
libtpu: 0.0.40
codegen_flags: <defaults>
</compile_context>

<pallas_src>
import functools

import jax
import jax.numpy as jnp
from jax import lax
from jax.experimental import pallas as pl
from jax.experimental.pallas import tpu as pltpu

P = 3            # max spatial padding (7x7 conv, padding=3)
KH = 2 * P + 1   # height taps covered by the fused weight (7)


def _round_up(x, m):
    return (x + m - 1) // m * m


def _toeplitz(w_hwio, W):
    """Expand an HWIO conv weight into per-height-tap width-Toeplitz matrices.

    Returns (KH, (W+2P)*cin, W*cout) f32 such that, for output row y,
        out_row(y)[x*cout + co] = sum_dy  xpad_row(y + dy) @ T[dy]
    where xpad_row is the input row zero-padded by P in width and flattened as
    lane index xw*cin + ci, and xpad is also zero-padded by P in height.
    """
    kh, kw, cin, cout = w_hwio.shape
    Wp = W + 2 * P
    off_h = P - (kh - 1) // 2
    off_w = P - (kw - 1) // 2
    w = w_hwio.astype(jnp.float32)
    zero = jnp.zeros((Wp * cin, W * cout), jnp.float32)
    taps = []
    for dy in range(KH):
        i = dy - off_h
        if 0 <= i < kh:
            m = zero
            for j in range(kw):
                eye = jnp.eye(Wp, W, k=-(j + off_w), dtype=jnp.float32)
                m = m + jnp.kron(eye, w[i, j])
            taps.append(m)
        else:
            taps.append(zero)
    return jnp.stack(taps)


def prepare_ble_params(p, W, compute_dtype=jnp.float32):
    """Fold the five convs + eval-mode BN into kernel-ready fused tensors."""
    w77, w71, w17, w33, w11 = p["w77"], p["w71"], p["w17"], p["w33"], p["w11"]
    b77, b71, b17, b33, b11 = p["b77"], p["b71"], p["b17"], p["b33"], p["b11"]
    s, t = p["bn_scale"], p["bn_shift"]        # (cout,)

    # conv1x7(conv7x1(x)) is exactly a single 3x3 conv with composed weights.
    # (The intermediate bias b71 interacts with the 1x7 conv's width padding at
    #  the two boundary columns; corrected below via the per-lane shift.)
    wcomp = jnp.einsum("iac,jcb->ijab", w71[:, 0], w17[0])   # (3,3,cin,cout)

    t77 = _toeplitz(w77, W)
    tc = _toeplitz(wcomp, W)
    t33 = _toeplitz(w33, W)
    wt = jnp.concatenate([t77, tc, t33], axis=2)   # (KH, (W+2P)*cin, 3*W*cout)
    K = wt.shape[1]
    Kp = _round_up(K, 128)
    wt = jnp.pad(wt, ((0, 0), (0, Kp - K), (0, 0)))

    # Per-lane affine (bias + eval-mode BN folded), per output group:
    #   b7  group: relu(bn(conv7x7(x)+b77)) -> scale=s, shift=s*b77+t
    #   c17 group: bn(conv1x7(conv7x1(x)))  -> scale=s, shift below
    #   b3  group: bn(conv3x3(x)+b33)       -> scale=s, shift=s*b33+t
    sc_grp = jnp.tile(s, W)                                  # (W*cout,)
    sh77 = jnp.tile(s * b77 + t, W)
    sh33 = jnp.tile(s * b33 + t, W)
    w17_sum = w17[0, 0] + w17[0, 1] + w17[0, 2]
    base = b17 + b71 @ w17_sum                               # interior columns
    shc = jnp.tile((s * base + t)[None, :], (W, 1))          # (W, cout)
    shc = shc.at[0].add(-s * (b71 @ w17[0, 0]))              # x == 0
    shc = shc.at[W - 1].add(-s * (b71 @ w17[0, 2]))          # x == W-1
    scale = jnp.concatenate([sc_grp, sc_grp, sc_grp]).reshape(1, -1)
    shift = jnp.concatenate([sh77, shc.reshape(-1), sh33]).reshape(1, -1)

    # 1x1 conv as a block-diagonal (W*cout, W*cout) matmul (shared by both uses).
    w11blk = jnp.kron(jnp.eye(W, dtype=jnp.float32), w11.astype(jnp.float32))
    b11row = jnp.tile(b11, W).reshape(1, -1)

    return dict(
        wt=wt.astype(compute_dtype),
        scale=scale.astype(jnp.float32),
        shift=shift.astype(jnp.float32),
        w11blk=w11blk.astype(compute_dtype),
        b11row=b11row.astype(jnp.float32),
    )


def ble_kernel(x_ref, wt_ref, scale_ref, shift_ref, w11_ref, b11_ref, o_ref,
               *, H, WC):
    # x_ref: (Hp, Kp) — batch dim squeezed by the BlockSpec.
    Kp = x_ref.shape[-1]
    acc = jnp.zeros((H, wt_ref.shape[-1]), jnp.float32)
    for dy in range(KH):  # 7 K-stacked taps, K = Kp (=128), Nout = 3*WC (=384)
        lhs = x_ref[dy:dy + H, :]                           # pure 2-D slice
        acc = acc + jnp.dot(lhs, wt_ref[dy], preferred_element_type=jnp.float32)

    z = acc * scale_ref[...] + shift_ref[...]        # (H, 3*WC), lane-dense
    b7 = jnp.maximum(z[:, :WC], 0.0)                 # relu(bn(conv7x7(x)))
    c17 = z[:, WC:2 * WC]                            # bn(conv1x7(conv7x1(x)))
    b3 = z[:, 2 * WC:]                               # bn(conv3x3(x))

    w11b = w11_ref[...]
    b11r = b11_ref[...]
    cdt = w11b.dtype
    b171 = jnp.dot(c17.astype(cdt), w11b,
                   preferred_element_type=jnp.float32) + b11r
    qk = jnp.dot((b7 * b171).astype(cdt), w11b,
                 preferred_element_type=jnp.float32) + b11r
    bqk = pl.reciprocal(1.0 + jnp.exp(-qk), approx=True)   # sigmoid (EUP slot)
    o_ref[...] = (bqk * b3).astype(o_ref.dtype)


def ble_block(x_nhwc, kp):
    """x_nhwc: (B, H, W, cin) f32.  kp: output of prepare_ble_params."""
    B, H, W, cin = x_nhwc.shape
    assert H % 8 == 0, "H must be a multiple of 8 for the lane-dense layout"
    wt, scale, shift = kp["wt"], kp["scale"], kp["shift"]
    w11blk, b11row = kp["w11blk"], kp["b11row"]
    Kp = wt.shape[1]
    WC = w11blk.shape[0]
    cout = WC // W
    Hp = _round_up(H + 2 * P, 8)
    K = (W + 2 * P) * cin

    # Layout glue (wrapper side, free): pad spatially, fold (width, cin) into
    # the lane axis, pad rows/K up to aligned block sizes.
    xr = jnp.pad(x_nhwc, ((0, 0), (P, P), (P, P), (0, 0)))
    xr = xr.reshape(B, H + 2 * P, K)
    xr = jnp.pad(xr, ((0, 0), (0, Hp - (H + 2 * P)), (0, Kp - K)))
    xr = xr.astype(wt.dtype)

    flops = 2 * B * H * (KH * Kp * wt.shape[2] + 2 * WC * WC)
    bytes_accessed = int(
        sum(a.size * a.dtype.itemsize
            for a in (xr, wt, scale, shift, w11blk, b11row)) + B * H * WC * 4)

    kern = functools.partial(ble_kernel, H=H, WC=WC)
    out2d = pl.pallas_call(
        kern,
        out_shape=jax.ShapeDtypeStruct((B * H, WC), jnp.float32),
        grid_spec=pltpu.PrefetchScalarGridSpec(
            num_scalar_prefetch=0,
            grid=(B,),
            in_specs=[
                # Batch dim squeezed -> kernel sees a clean (Hp, Kp) tile.
                pl.BlockSpec((None, Hp, Kp), lambda b: (b, 0, 0)),
                pl.BlockSpec(wt.shape, lambda b: (0, 0, 0)),      # fused conv weights
                pl.BlockSpec(scale.shape, lambda b: (0, 0)),
                pl.BlockSpec(shift.shape, lambda b: (0, 0)),
                pl.BlockSpec(w11blk.shape, lambda b: (0, 0)),
                pl.BlockSpec(b11row.shape, lambda b: (0, 0)),
            ],
            out_specs=pl.BlockSpec((H, WC), lambda b: (b, 0)),
        ),
        compiler_params=pltpu.CompilerParams(
            dimension_semantics=("parallel",),
            vmem_limit_bytes=32 * 1024 * 1024),
        cost_estimate=pl.CostEstimate(flops=int(flops),
                                      transcendentals=int(B * H * WC),
                                      bytes_accessed=bytes_accessed),
    )(xr, wt, scale, shift, w11blk, b11row)
    return out2d.reshape(B, H, W, cout)


def init_params(key, cin, cout):
    ks = jax.random.split(key, 12)

    def w(k, shape):
        return (0.1 * jax.random.normal(k, shape)).astype(jnp.float32)

    params = dict(
        w77=w(ks[0], (7, 7, cin, cout)),  b77=w(ks[1], (cout,)),
        w71=w(ks[2], (3, 1, cin, cout)),  b71=w(ks[3], (cout,)),
        w17=w(ks[4], (1, 3, cout, cout)), b17=w(ks[5], (cout,)),
        w33=w(ks[6], (3, 3, cin, cout)),  b33=w(ks[7], (cout,)),
        w11=w(ks[8], (cout, cout)),       b11=w(ks[9], (cout,)),
    )
    gamma = (1.0 + 0.1 * jax.random.normal(ks[10], (cout,))).astype(jnp.float32)
    beta = (0.1 * jax.random.normal(ks[11], (cout,))).astype(jnp.float32)
    running_mean = jnp.zeros((cout,), jnp.float32)
    running_var = jnp.ones((cout,), jnp.float32)
    eps = 1e-5
    scale = gamma / jnp.sqrt(running_var + eps)
    shift = beta - running_mean * scale
    params["bn_scale"] = scale
    params["bn_shift"] = shift
    return params


# ---------------- pure-JAX reference (sanity check) ----------------
def _conv_ref(x, w, b, pad):
    y = lax.conv_general_dilated(
        x, w, window_strides=(1, 1),
        padding=[(pad[0], pad[0]), (pad[1], pad[1])],
        dimension_numbers=("NHWC", "HWIO", "NHWC"),
        precision=lax.Precision.HIGHEST)
    return y + b.reshape(1, 1, 1, -1)


def ble_ref(x, p):
    s = p["bn_scale"].reshape(1, 1, 1, -1)
    t = p["bn_shift"].reshape(1, 1, 1, -1)

    def bn(v):
        return v * s + t

    w11_4d = p["w11"].reshape(1, 1, *p["w11"].shape)
    b7 = jax.nn.relu(bn(_conv_ref(x, p["w77"], p["b77"], (3, 3))))
    b71 = _conv_ref(x, p["w71"], p["b71"], (1, 0))
    c17 = _conv_ref(b71, p["w17"], p["b17"], (0, 1))
    b171 = _conv_ref(bn(c17), w11_4d, p["b11"], (0, 0))
    bqk = jax.nn.sigmoid(_conv_ref(b7 * b171, w11_4d, p["b11"], (0, 0)))
    b3 = bn(_conv_ref(x, p["w33"], p["b33"], (1, 1)))
    return bqk * b3


if __name__ == "__main__":
    key = jax.random.PRNGKey(0)
    kx, kp_key = jax.random.split(key)
    B, cin, cout, H, W = 2, 4, 8, 16, 16
    x = jax.random.normal(kx, (B, H, W, cin), jnp.float32)
    params = init_params(kp_key, cin, cout)
    ref = jax.block_until_ready(ble_ref(x, params))

    ble = jax.jit(ble_block)

    # f32 path (exact semantics check).
    kp_f32 = prepare_ble_params(params, W, compute_dtype=jnp.float32)
    out = jax.block_until_ready(ble(x, kp_f32))
    assert out.shape == (B, H, W, cout) and out.dtype == jnp.float32
    err = float(jnp.max(jnp.abs(out - ref)))
    if err > 3e-2:
        raise AssertionError(f"f32 kernel/reference mismatch: max abs err = {err}")

    # bf16 MXU path (v6e/v7x fast path): bf16 conv operands, f32 accumulation
    # and f32 elementwise math; halves the dominant fused-weight DMA.
    kp_bf16 = prepare_ble_params(params, W, compute_dtype=jnp.bfloat16)
    out_bf16 = jax.block_until_ready(ble(x, kp_bf16))
    err_bf16 = float(jnp.max(jnp.abs(out_bf16 - ref)))
    if err_bf16 > 2e-1:
        raise AssertionError(
            f"bf16 kernel/reference mismatch: max abs err = {err_bf16}")

    print("KERNEL_OK")
</pallas_src>

<mosaic_0001>
module attributes {stable_mosaic.version = 11 : i64} {
  func.func @ble_kernel(%arg0: i32, %arg1: memref<1x24x128xf32, #tpu.memory_space<vmem>>, %arg2: memref<7x128x384xf32, #tpu.memory_space<vmem>>, %arg3: memref<1x384xf32, #tpu.memory_space<vmem>>, %arg4: memref<1x384xf32, #tpu.memory_space<vmem>>, %arg5: memref<128x128xf32, #tpu.memory_space<vmem>>, %arg6: memref<1x128xf32, #tpu.memory_space<vmem>>, %arg7: memref<16x128xf32, #tpu.memory_space<vmem>>) attributes {dimension_semantics = [#tpu.dimension_semantics<parallel>], iteration_bounds = array<i64: 2>, scalar_prefetch = 0 : i64, scratch_operands = 0 : i64, tpu.core_type = #tpu.core_type<tc>, window_params = [{transform_indices = @transform_0, window_bounds = array<i64: 1, 24, 128>}, {pipeline_mode = #tpu.pipeline_mode<synchronous>, transform_indices = @transform_1, window_bounds = array<i64: 7, 128, 384>}, {pipeline_mode = #tpu.pipeline_mode<synchronous>, transform_indices = @transform_2, window_bounds = array<i64: 1, 384>}, {pipeline_mode = #tpu.pipeline_mode<synchronous>, transform_indices = @transform_3, window_bounds = array<i64: 1, 384>}, {pipeline_mode = #tpu.pipeline_mode<synchronous>, transform_indices = @transform_4, window_bounds = array<i64: 128, 128>}, {pipeline_mode = #tpu.pipeline_mode<synchronous>, transform_indices = @transform_5, window_bounds = array<i64: 1, 128>}, {transform_indices = @transform_6, window_bounds = array<i64: 16, 128>}]} {
    %cst = arith.constant 0.000000e+00 : f32
    %0 = vector.broadcast %cst : f32 to vector<16x384xf32>
    %c0 = arith.constant 0 : index
    %c0_0 = arith.constant 0 : index
    %c0_1 = arith.constant 0 : index
    %1 = vector.load %arg1[%c0, %c0_0, %c0_1] : memref<1x24x128xf32, #tpu.memory_space<vmem>>, vector<1x16x128xf32>
    %2 = vector.shape_cast %1 : vector<1x16x128xf32> to vector<16x128xf32>
    %c0_2 = arith.constant 0 : index
    %c0_3 = arith.constant 0 : index
    %c0_4 = arith.constant 0 : index
    %3 = vector.load %arg2[%c0_2, %c0_3, %c0_4] : memref<7x128x384xf32, #tpu.memory_space<vmem>>, vector<1x128x384xf32>
    %4 = vector.shape_cast %3 : vector<1x128x384xf32> to vector<128x384xf32>
    %cst_5 = arith.constant dense<0.000000e+00> : vector<16x384xf32>
    %5 = tpu.matmul %2, %4, %cst_5 {dimension_numbers = #tpu.dot_dimension_numbers<[1], [0], [0], [1], [0, 0, 1, 1], [], []>} : vector<16x128xf32>, vector<128x384xf32>, vector<16x384xf32> -> vector<16x384xf32>
    %6 = arith.addf %0, %5 : vector<16x384xf32>
    %c0_6 = arith.constant 0 : index
    %c1 = arith.constant 1 : index
    %c0_7 = arith.constant 0 : index
    %7 = vector.load %arg1[%c0_6, %c1, %c0_7] : memref<1x24x128xf32, #tpu.memory_space<vmem>>, vector<1x16x128xf32>
    %8 = vector.shape_cast %7 : vector<1x16x128xf32> to vector<16x128xf32>
    %c1_8 = arith.constant 1 : index
    %c0_9 = arith.constant 0 : index
    %c0_10 = arith.constant 0 : index
    %9 = vector.load %arg2[%c1_8, %c0_9, %c0_10] : memref<7x128x384xf32, #tpu.memory_space<vmem>>, vector<1x128x384xf32>
    %10 = vector.shape_cast %9 : vector<1x128x384xf32> to vector<128x384xf32>
    %cst_11 = arith.constant dense<0.000000e+00> : vector<16x384xf32>
    %11 = tpu.matmul %8, %10, %cst_11 {dimension_numbers = #tpu.dot_dimension_numbers<[1], [0], [0], [1], [0, 0, 1, 1], [], []>} : vector<16x128xf32>, vector<128x384xf32>, vector<16x384xf32> -> vector<16x384xf32>
    %12 = arith.addf %6, %11 : vector<16x384xf32>
    %c0_12 = arith.constant 0 : index
    %c2 = arith.constant 2 : index
    %c0_13 = arith.constant 0 : index
    %13 = vector.load %arg1[%c0_12, %c2, %c0_13] : memref<1x24x128xf32, #tpu.memory_space<vmem>>, vector<1x16x128xf32>
    %14 = vector.shape_cast %13 : vector<1x16x128xf32> to vector<16x128xf32>
    %c2_14 = arith.constant 2 : index
    %c0_15 = arith.constant 0 : index
    %c0_16 = arith.constant 0 : index
    %15 = vector.load %arg2[%c2_14, %c0_15, %c0_16] : memref<7x128x384xf32, #tpu.memory_space<vmem>>, vector<1x128x384xf32>
    %16 = vector.shape_cast %15 : vector<1x128x384xf32> to vector<128x384xf32>
    %cst_17 = arith.constant dense<0.000000e+00> : vector<16x384xf32>
    %17 = tpu.matmul %14, %16, %cst_17 {dimension_numbers = #tpu.dot_dimension_numbers<[1], [0], [0], [1], [0, 0, 1, 1], [], []>} : vector<16x128xf32>, vector<128x384xf32>, vector<16x384xf32> -> vector<16x384xf32>
    %18 = arith.addf %12, %17 : vector<16x384xf32>
    %c0_18 = arith.constant 0 : index
    %c3 = arith.constant 3 : index
    %c0_19 = arith.constant 0 : index
    %19 = vector.load %arg1[%c0_18, %c3, %c0_19] : memref<1x24x128xf32, #tpu.memory_space<vmem>>, vector<1x16x128xf32>
    %20 = vector.shape_cast %19 : vector<1x16x128xf32> to vector<16x128xf32>
    %c3_20 = arith.constant 3 : index
    %c0_21 = arith.constant 0 : index
    %c0_22 = arith.constant 0 : index
    %21 = vector.load %arg2[%c3_20, %c0_21, %c0_22] : memref<7x128x384xf32, #tpu.memory_space<vmem>>, vector<1x128x384xf32>
    %22 = vector.shape_cast %21 : vector<1x128x384xf32> to vector<128x384xf32>
    %cst_23 = arith.constant dense<0.000000e+00> : vector<16x384xf32>
    %23 = tpu.matmul %20, %22, %cst_23 {dimension_numbers = #tpu.dot_dimension_numbers<[1], [0], [0], [1], [0, 0, 1, 1], [], []>} : vector<16x128xf32>, vector<128x384xf32>, vector<16x384xf32> -> vector<16x384xf32>
    %24 = arith.addf %18, %23 : vector<16x384xf32>
    %c0_24 = arith.constant 0 : index
    %c4 = arith.constant 4 : index
    %c0_25 = arith.constant 0 : index
    %25 = vector.load %arg1[%c0_24, %c4, %c0_25] : memref<1x24x128xf32, #tpu.memory_space<vmem>>, vector<1x16x128xf32>
    %26 = vector.shape_cast %25 : vector<1x16x128xf32> to vector<16x128xf32>
    %c4_26 = arith.constant 4 : index
    %c0_27 = arith.constant 0 : index
    %c0_28 = arith.constant 0 : index
    %27 = vector.load %arg2[%c4_26, %c0_27, %c0_28] : memref<7x128x384xf32, #tpu.memory_space<vmem>>, vector<1x128x384xf32>
    %28 = vector.shape_cast %27 : vector<1x128x384xf32> to vector<128x384xf32>
    %cst_29 = arith.constant dense<0.000000e+00> : vector<16x384xf32>
    %29 = tpu.matmul %26, %28, %cst_29 {dimension_numbers = #tpu.dot_dimension_numbers<[1], [0], [0], [1], [0, 0, 1, 1], [], []>} : vector<16x128xf32>, vector<128x384xf32>, vector<16x384xf32> -> vector<16x384xf32>
    %30 = arith.addf %24, %29 : vector<16x384xf32>
    %c0_30 = arith.constant 0 : index
    %c5 = arith.constant 5 : index
    %c0_31 = arith.constant 0 : index
    %31 = vector.load %arg1[%c0_30, %c5, %c0_31] : memref<1x24x128xf32, #tpu.memory_space<vmem>>, vector<1x16x128xf32>
    %32 = vector.shape_cast %31 : vector<1x16x128xf32> to vector<16x128xf32>
    %c5_32 = arith.constant 5 : index
    %c0_33 = arith.constant 0 : index
    %c0_34 = arith.constant 0 : index
    %33 = vector.load %arg2[%c5_32, %c0_33, %c0_34] : memref<7x128x384xf32, #tpu.memory_space<vmem>>, vector<1x128x384xf32>
    %34 = vector.shape_cast %33 : vector<1x128x384xf32> to vector<128x384xf32>
    %cst_35 = arith.constant dense<0.000000e+00> : vector<16x384xf32>
    %35 = tpu.matmul %32, %34, %cst_35 {dimension_numbers = #tpu.dot_dimension_numbers<[1], [0], [0], [1], [0, 0, 1, 1], [], []>} : vector<16x128xf32>, vector<128x384xf32>, vector<16x384xf32> -> vector<16x384xf32>
    %36 = arith.addf %30, %35 : vector<16x384xf32>
    %c0_36 = arith.constant 0 : index
    %c6 = arith.constant 6 : index
    %c0_37 = arith.constant 0 : index
    %37 = vector.load %arg1[%c0_36, %c6, %c0_37] : memref<1x24x128xf32, #tpu.memory_space<vmem>>, vector<1x16x128xf32>
    %38 = vector.shape_cast %37 : vector<1x16x128xf32> to vector<16x128xf32>
    %c6_38 = arith.constant 6 : index
    %c0_39 = arith.constant 0 : index
    %c0_40 = arith.constant 0 : index
    %39 = vector.load %arg2[%c6_38, %c0_39, %c0_40] : memref<7x128x384xf32, #tpu.memory_space<vmem>>, vector<1x128x384xf32>
    %40 = vector.shape_cast %39 : vector<1x128x384xf32> to vector<128x384xf32>
    %cst_41 = arith.constant dense<0.000000e+00> : vector<16x384xf32>
    %41 = tpu.matmul %38, %40, %cst_41 {dimension_numbers = #tpu.dot_dimension_numbers<[1], [0], [0], [1], [0, 0, 1, 1], [], []>} : vector<16x128xf32>, vector<128x384xf32>, vector<16x384xf32> -> vector<16x384xf32>
    %42 = arith.addf %36, %41 : vector<16x384xf32>
    %c0_42 = arith.constant 0 : index
    %c0_43 = arith.constant 0 : index
    %43 = vector.load %arg3[%c0_42, %c0_43] : memref<1x384xf32, #tpu.memory_space<vmem>>, vector<1x384xf32>
    %44 = vector.broadcast %43 : vector<1x384xf32> to vector<16x384xf32>
    %45 = arith.mulf %42, %44 : vector<16x384xf32>
    %c0_44 = arith.constant 0 : index
    %c0_45 = arith.constant 0 : index
    %46 = vector.load %arg4[%c0_44, %c0_45] : memref<1x384xf32, #tpu.memory_space<vmem>>, vector<1x384xf32>
    %47 = vector.broadcast %46 : vector<1x384xf32> to vector<16x384xf32>
    %48 = arith.addf %45, %47 : vector<16x384xf32>
    %49 = vector.extract_strided_slice %48 {offsets = [0, 0], sizes = [16, 128], strides = [1, 1]} : vector<16x384xf32> to vector<16x128xf32>
    %cst_46 = arith.constant 0.000000e+00 : f32
    %50 = vector.broadcast %cst_46 : f32 to vector<16x128xf32>
    %51 = arith.maximumf %49, %50 : vector<16x128xf32>
    %52 = vector.extract_strided_slice %48 {offsets = [0, 128], sizes = [16, 128], strides = [1, 1]} : vector<16x384xf32> to vector<16x128xf32>
    %53 = vector.extract_strided_slice %48 {offsets = [0, 256], sizes = [16, 128], strides = [1, 1]} : vector<16x384xf32> to vector<16x128xf32>
    %c0_47 = arith.constant 0 : index
    %c0_48 = arith.constant 0 : index
    %54 = vector.load %arg5[%c0_47, %c0_48] : memref<128x128xf32, #tpu.memory_space<vmem>>, vector<128x128xf32>
    %c0_49 = arith.constant 0 : index
    %c0_50 = arith.constant 0 : index
    %55 = vector.load %arg6[%c0_49, %c0_50] : memref<1x128xf32, #tpu.memory_space<vmem>>, vector<1x128xf32>
    %cst_51 = arith.constant dense<0.000000e+00> : vector<16x128xf32>
    %56 = tpu.matmul %52, %54, %cst_51 {dimension_numbers = #tpu.dot_dimension_numbers<[1], [0], [0], [1], [0, 0, 1, 1], [], []>} : vector<16x128xf32>, vector<128x128xf32>, vector<16x128xf32> -> vector<16x128xf32>
    %57 = vector.broadcast %55 : vector<1x128xf32> to vector<16x128xf32>
    %58 = arith.addf %56, %57 : vector<16x128xf32>
    %59 = arith.mulf %51, %58 : vector<16x128xf32>
    %cst_52 = arith.constant dense<0.000000e+00> : vector<16x128xf32>
    %60 = tpu.matmul %59, %54, %cst_52 {dimension_numbers = #tpu.dot_dimension_numbers<[1], [0], [0], [1], [0, 0, 1, 1], [], []>} : vector<16x128xf32>, vector<128x128xf32>, vector<16x128xf32> -> vector<16x128xf32>
    %61 = vector.broadcast %55 : vector<1x128xf32> to vector<16x128xf32>
    %62 = arith.addf %60, %61 : vector<16x128xf32>
    %cst_53 = arith.constant 0.000000e+00 : f32
    %63 = vector.broadcast %cst_53 : f32 to vector<16x128xf32>
    %64 = arith.subf %63, %62 : vector<16x128xf32>
    %65 = math.exp %64 : vector<16x128xf32>
    %cst_54 = arith.constant 1.000000e+00 : f32
    %66 = vector.broadcast %cst_54 : f32 to vector<16x128xf32>
    %67 = arith.addf %66, %65 : vector<16x128xf32>
    %68 = tpu.reciprocal %67 {approx = true} : vector<16x128xf32> -> vector<16x128xf32>
    %69 = arith.mulf %68, %53 : vector<16x128xf32>
    %c0_55 = arith.constant 0 : index
    %c0_56 = arith.constant 0 : index
    %70 = vector.load %arg7[%c0_55, %c0_56] : memref<16x128xf32, #tpu.memory_space<vmem>>, vector<16x128xf32>
    tpu.vector_store %arg7[%c0_55, %c0_56], %69 {strides = array<i32>} : memref<16x128xf32, #tpu.memory_space<vmem>>, vector<16x128xf32>,
    return
  }
  func.func @transform_0(%arg0: i32) -> (i32, i32, i32) {
    %c0_i32 = arith.constant 0 : i32
    %c0_i32_0 = arith.constant 0 : i32
    %c0_i32_1 = arith.constant 0 : i32
    return %arg0, %c0_i32, %c0_i32_0 : i32, i32, i32
  }
  func.func @transform_1(%arg0: i32) -> (i32, i32, i32) {
    %c0_i32 = arith.constant 0 : i32
    %c0_i32_0 = arith.constant 0 : i32
    %c0_i32_1 = arith.constant 0 : i32
    %c0_i32_2 = arith.constant 0 : i32
    return %c0_i32, %c0_i32_0, %c0_i32_1 : i32, i32, i32
  }
  func.func @transform_2(%arg0: i32) -> (i32, i32) {
    %c0_i32 = arith.constant 0 : i32
    %c0_i32_0 = arith.constant 0 : i32
    %c0_i32_1 = arith.constant 0 : i32
    return %c0_i32, %c0_i32_0 : i32, i32
  }
  func.func @transform_3(%arg0: i32) -> (i32, i32) {
    %c0_i32 = arith.constant 0 : i32
    %c0_i32_0 = arith.constant 0 : i32
    %c0_i32_1 = arith.constant 0 : i32
    return %c0_i32, %c0_i32_0 : i32, i32
  }
  func.func @transform_4(%arg0: i32) -> (i32, i32) {
    %c0_i32 = arith.constant 0 : i32
    %c0_i32_0 = arith.constant 0 : i32
    %c0_i32_1 = arith.constant 0 : i32
    return %c0_i32, %c0_i32_0 : i32, i32
  }
  func.func @transform_5(%arg0: i32) -> (i32, i32) {
    %c0_i32 = arith.constant 0 : i32
    %c0_i32_0 = arith.constant 0 : i32
    %c0_i32_1 = arith.constant 0 : i32
    return %c0_i32, %c0_i32_0 : i32, i32
  }
  func.func @transform_6(%arg0: i32) -> (i32, i32) {
    %c0_i32 = arith.constant 0 : i32
    %c0_i32_0 = arith.constant 0 : i32
    return %arg0, %c0_i32 : i32, i32
  }
}

</mosaic_0001>

<bundles_post_ra>
// kernel: ble_block.1
= control target key start
LH: loop header
LB: loop body
LE: loop exit
PB: predicated region body
PF: predicated region fallthrough
CT: control target
= control target key end

     0   :  { %11 = vsyncpa [#allocation3], 0  ;;  %s1914_s0 = inlined_call_operand.vmem [shape: f32[2,24,128], index: 0, kind: input, shape index: {}]   ;;  %s1915_s1 = inlined_call_operand.hbm [shape: f32[7,128,384], index: 1, kind: input, shape index: {}]   ;;  %s1916_s2 = inlined_call_operand.hbm [shape: f32[1,384], index: 2, kind: input, shape index: {}]   ;;  %s1917_s3 = inlined_call_operand.hbm [shape: f32[1,384], index: 3, kind: input, shape index: {}]   ;;  %s1918_s4 = inlined_call_operand.hbm [shape: f32[128,128], index: 4, kind: input, shape index: {}]   ;;  %s1919_s5 = inlined_call_operand.hbm [shape: f32[1,128], index: 5, kind: input, shape index: {}]   ;;  %s1920_s6 = inlined_call_operand.vmem [shape: f32[32,128], index: 6, kind: output, shape index: {}]  }
   0x1   :  { %12 = vsyncpa [#allocation5], 0 }
   0x2   :  { %13 = vsyncpa [#allocation8], 0  ;;  %s1740_s21 = smov 0  }
   0x3 LB: > { %s207_s24 = sshll.u32 %s1916_s2, 4  ;;  %s1749_s25 = sadd.s32 4294967295, %s1694_s21   ;;  %s1694_s21 = sphi %s1740_s21, %s19_s21   ;;  %s208_s24 = int_to_ptr.hbm [resolvable:$true] %s207_s24 }
   0x4   : > { %p1419_p0 = scmp.ge.s32.totalorder %s1694_s21, 1  ;;  %p181_p1 = scmp.lt.s32.totalorder %s1694_s21, 3 }
   0x5   : > { %p1490_p2 = scmp.eq.s32.totalorder %s1749_s25, 0  ;;  %s1696_s27 = smov [#allocation4]  }
   0x6   : > { %p1754_p3 = pnand %p1419_p0, %p181_p1  ;;  %s209_s28 = sshll.u32 %s1696_s27, 4  ;;  %s210_s28 = int_to_ptr.vmem [resolvable:$true] %s209_s28 }
   0x7   : > { %s230_s7 = sshll.u32 %s1918_s4, 4  ;;  %s1697_s9 = smov [#allocation7]   ;;  %s231_s7 = int_to_ptr.hbm [resolvable:$true] %s230_s7 }
   0x8   : > { %p1474_p4 = pneg %p1754_p3  ;;  %s232_s10 = sshll.u32 %s1697_s9, 4  ;;  %s233_s10 = int_to_ptr.vmem [resolvable:$true] %s232_s10 }
   0x9   : > { %s192_s13 = sshll.u32 %s1915_s1, 4  ;;  %s1698_s14 = smov 128   ;;  %s193_s13 = int_to_ptr.hbm [resolvable:$true] %s192_s13 }
   0xa   : > { %p1765_p5 = pnand %p1490_p2, %p1474_p4  ;;  %s1699_s15 = smov 8  }
   0xb   : > { %s1700_s16 = smov [#allocation2]   ;;  %s1701_s18 = smov 384  }
   0xc   : > { %1480 = dma.hbm_to_vmem [thread:$0]  (!%p1765_p5), %s208_s24, 48, %s210_s28, [#allocation5]  }
   0xd   : > { %1486 = dma.hbm_to_vmem [thread:$0]  (!%p1765_p5), %s231_s7, 2048, %s233_s10, [#allocation8], %s1698_s14, %s1698_s14, %s1699_s15  }
   0xe   : > { %s194_s17 = sshll.u32 %s1700_s16, 4  ;;  %s1702_s19 = smov 24   ;;  %s195_s17 = int_to_ptr.vmem [resolvable:$true] %s194_s17 }
   0xf   : > { %1477 = dma.hbm_to_vmem [thread:$0]  (!%p1765_p5), %s193_s13, 43008, %s195_s17, [#allocation3], %s1701_s18, %s1701_s18, %s1702_s19  }
  0x10   : > { %s219_s23 = sshll.u32 %s1917_s3, 4  ;;  %s1703_s24 = smov [#allocation6]   ;;  %s220_s23 = int_to_ptr.hbm [resolvable:$true] %s219_s23 }
  0x11   : > { %s221_s27 = sshll.u32 %s1703_s24, 4  ;;  %s245_s30 = sshll.u32 %s1919_s5, 4  ;;  %s222_s27 = int_to_ptr.vmem [resolvable:$true] %s221_s27  ;;  %s246_s30 = int_to_ptr.hbm [resolvable:$true] %s245_s30 }
  0x12   : > { %1483 = dma.hbm_to_vmem [thread:$0]  (!%p1765_p5), %s220_s23, 48, %s222_s27, [#allocation5]  }
  0x13   : > { %s1704_s7 = smov [#allocation9]   ;;  %268 = sbr.rel (%p1754_p3) target bundleno = 642 (0x282), region = 44 }
  0x14   : > { %s247_s9 = sshll.u32 %s1704_s7, 4  ;;  %s248_s9 = int_to_ptr.vmem [resolvable:$true] %s247_s9 }
  0x15   : > { %1489 = dma.hbm_to_vmem [thread:$0]  (!%p1765_p5), %s246_s30, 16, %s248_s9, [#allocation8]  }
  0x18   : > { %1681 = dma.done.wait (%p1490_p2), [#allocation3], 43008  }
  0x19   : > { %1683 = vsyncadd (%p1490_p2), [#allocation3], 4294924288 }
  0x1a   : > { %1685 = dma.done.wait (%p1490_p2), [#allocation5], 96  }
  0x1b   : > { %1687 = vsyncadd (%p1490_p2), [#allocation5], 4294967200 }
  0x1c   : > { %1689 = dma.done.wait (%p1490_p2), [#allocation8], 2064  }
  0x1d   : > { %1691 = vsyncadd (%p1490_p2), [#allocation8], 4294965232  ;;  %v428_v0 = vld [vmem:[#allocation2 + $0x2e8] sm:$0xff]  ;;  %v429_v1 = vld [vmem:[#allocation2 + $0x2f0] sm:$0xff]  ;;  %p319_p6 = scmp.lt.s32.totalorder %s1749_s25, 1  ;;  %s1433_s13 = sshll.u32 %s1749_s25, 1 }
  0x1e   : > { %v430_v2 = vld [vmem:[#allocation2 + $0x2f8] sm:$0xff]  ;;  %431 = vmatpush.msra.mxu0 %v428_v0  ;;  %454 = vmatpush.msra.mxu1 %v429_v1  ;;  %v377_v3 = vld [vmem:[#allocation2 + $0x168] sm:$0xff]  ;;  %v425_v4 = vld [vmem:[#allocation2 + $0x2d0] sm:$0xff]  ;;  %p325_p7 = scmp.lt.s32.totalorder %s1433_s13, 3 }
  0x1f   : > { %v426_v5 = vld [vmem:[#allocation2 + $0x2d8] sm:$0xff]  ;;  %477 = vmatpush.msra.mxu2 %v430_v2  ;;  %500 = vmatpush.msra.mxu3 %v377_v3  ;;  %v427_v6 = vld [vmem:[#allocation2 + $0x2e0] sm:$0xff]  ;;  %v374_v7 = vld [vmem:[#allocation2 + $0x150] sm:$0xff]  ;;  %s1806_s26 = scalar_select %p319_p6, %s1749_s25, 1 }
  0x20   : > { %v422_v8 = vld [vmem:[#allocation2 + $0x2b8] sm:$0xff]  ;;  %432 = vmatpush.msra.mxu0 %v425_v4  ;;  %455 = vmatpush.msra.mxu1 %v426_v5  ;;  %v423_v9 = vld [vmem:[#allocation2 + $0x2c0] sm:$0xff]  ;;  %v424_v10 = vld [vmem:[#allocation2 + $0x2c8] sm:$0xff]  ;;  %s1924_s13 = smov (!%p325_p7, %s1433_s13), 3 }
  0x21   : > { %v371_v11 = vld [vmem:[#allocation2 + $0x138] sm:$0xff]  ;;  %478 = vmatpush.msra.mxu2 %v427_v6  ;;  %501 = vmatpush.msra.mxu3 %v374_v7  ;;  %v419_v12 = vld [vmem:[#allocation2 + $0x2a0] sm:$0xff]  ;;  %v420_v13 = vld [vmem:[#allocation2 + $0x2a8] sm:$0xff]  ;;  %s1453_s8 = smul.u32 24, %s1806_s26  ;;  %s1434_s14 = sshll.u32 %s1924_s13, 3 }
  0x22   : > { %433 = vmatpush.msra.mxu0 %v422_v8  ;;  %456 = vmatpush.msra.mxu1 %v423_v9  ;;  %v421_v14 = vld [vmem:[#allocation2 + $0x2b0] sm:$0xff]  ;;  %v368_v15 = vld [vmem:[#allocation2 + $0x120] sm:$0xff]  ;;  %v416_v16 = vld [vmem:[#allocation2 + $0x288] sm:$0xff]  ;;  %s328_s17 = scalar_lea.vmem %s1920_s6, %s1434_s14 }
  0x23   : > { %479 = vmatpush.msra.mxu2 %v424_v10  ;;  %502 = vmatpush.msra.mxu3 %v371_v11  ;;  %v417_v17 = vld [vmem:[#allocation2 + $0x290] sm:$0xff]  ;;  %v418_v18 = vld [vmem:[#allocation2 + $0x298] sm:$0xff]  ;;  %v365_v19 = vld [vmem:[#allocation2 + $0x108] sm:$0xff]  ;;  %s1812_s12 = scalar_lea.vmem %s1914_s0, %s1453_s8 }
  0x24   : > { %434 = vmatpush.msra.mxu0 %v419_v12  ;;  %457 = vmatpush.msra.mxu1 %v420_v13  ;;  %v413_v20 = vld [vmem:[#allocation2 + $0x270] sm:$0xff]  ;;  %v414_v21 = vld [vmem:[#allocation2 + $0x278] sm:$0xff]  ;;  %v415_v22 = vld [vmem:[#allocation2 + $0x280] sm:$0xff] }
  0x25   : > { %480 = vmatpush.msra.mxu2 %v421_v14  ;;  %503 = vmatpush.msra.mxu3 %v368_v15  ;;  %v362_v23 = vld [vmem:[#allocation2 + $0xf0] sm:$0xff]  ;;  %v410_v24 = vld [vmem:[#allocation2 + $0x258] sm:$0xff]  ;;  %v411_v25 = vld [vmem:[#allocation2 + $0x260] sm:$0xff] }
  0x26   : > { %435 = vmatpush.msra.mxu0 %v416_v16  ;;  %458 = vmatpush.msra.mxu1 %v417_v17  ;;  %v412_v26 = vld [vmem:[#allocation2 + $0x268] sm:$0xff]  ;;  %v359_v27 = vld [vmem:[#allocation2 + $0xd8] sm:$0xff]  ;;  %v407_v28 = vld [vmem:[#allocation2 + $0x240] sm:$0xff] }
  0x27   : > { %481 = vmatpush.msra.mxu2 %v418_v18  ;;  %504 = vmatpush.msra.mxu3 %v365_v19  ;;  %v408_v29 = vld [vmem:[#allocation2 + $0x248] sm:$0xff]  ;;  %v409_v30 = vld [vmem:[#allocation2 + $0x250] sm:$0xff]  ;;  %v356_v31 = vld [vmem:[#allocation2 + $0xc0] sm:$0xff] }
  0x28   : > { %436 = vmatpush.msra.mxu0 %v413_v20  ;;  %459 = vmatpush.msra.mxu1 %v414_v21  ;;  %v404_v32 = vld [vmem:[#allocation2 + $0x228] sm:$0xff]  ;;  %v405_v33 = vld [vmem:[#allocation2 + $0x230] sm:$0xff]  ;;  %v406_v34 = vld [vmem:[#allocation2 + $0x238] sm:$0xff] }
  0x29   : > { %482 = vmatpush.msra.mxu2 %v415_v22  ;;  %505 = vmatpush.msra.mxu3 %v362_v23  ;;  %v353_v35 = vld [vmem:[#allocation2 + $0xa8] sm:$0xff]  ;;  %v401_v36 = vld [vmem:[#allocation2 + $0x210] sm:$0xff]  ;;  %v402_v37 = vld [vmem:[#allocation2 + $0x218] sm:$0xff] }
  0x2a   : > { %437 = vmatpush.msra.mxu0 %v410_v24  ;;  %460 = vmatpush.msra.mxu1 %v411_v25  ;;  %v403_v38 = vld [vmem:[#allocation2 + $0x220] sm:$0xff]  ;;  %v350_v39 = vld [vmem:[#allocation2 + $0x90] sm:$0xff]  ;;  %v398_v40 = vld [vmem:[#allocation2 + $0x1f8] sm:$0xff] }
  0x2b   : > { %483 = vmatpush.msra.mxu2 %v412_v26  ;;  %506 = vmatpush.msra.mxu3 %v359_v27  ;;  %v399_v41 = vld [vmem:[#allocation2 + $0x200] sm:$0xff]  ;;  %v400_v42 = vld [vmem:[#allocation2 + $0x208] sm:$0xff]  ;;  %v347_v43 = vld [vmem:[#allocation2 + $0x78] sm:$0xff] }
  0x2c   : > { %438 = vmatpush.msra.mxu0 %v407_v28  ;;  %461 = vmatpush.msra.mxu1 %v408_v29  ;;  %v395_v44 = vld [vmem:[#allocation2 + $0x1e0] sm:$0xff]  ;;  %v396_v45 = vld [vmem:[#allocation2 + $0x1e8] sm:$0xff]  ;;  %v397_v46 = vld [vmem:[#allocation2 + $0x1f0] sm:$0xff] }
  0x2d   : > { %484 = vmatpush.msra.mxu2 %v409_v30  ;;  %507 = vmatpush.msra.mxu3 %v356_v31  ;;  %v344_v47 = vld [vmem:[#allocation2 + $0x60] sm:$0xff]  ;;  %v392_v48 = vld [vmem:[#allocation2 + $0x1c8] sm:$0xff]  ;;  %v393_v49 = vld [vmem:[#allocation2 + $0x1d0] sm:$0xff] }
  0x2e   : > { %439 = vmatpush.msra.mxu0 %v404_v32  ;;  %462 = vmatpush.msra.mxu1 %v405_v33  ;;  %v394_v50 = vld [vmem:[#allocation2 + $0x1d8] sm:$0xff]  ;;  %v341_v51 = vld [vmem:[#allocation2 + $0x48] sm:$0xff]  ;;  %v389_v52 = vld [vmem:[#allocation2 + $0x1b0] sm:$0xff] }
  0x2f   : > { %485 = vmatpush.msra.mxu2 %v406_v34  ;;  %508 = vmatpush.msra.mxu3 %v353_v35  ;;  %v390_v53 = vld [vmem:[#allocation2 + $0x1b8] sm:$0xff]  ;;  %v391_v54 = vld [vmem:[#allocation2 + $0x1c0] sm:$0xff]  ;;  %v338_v55 = vld [vmem:[#allocation2 + $0x30] sm:$0xff] }
  0x30   : > { %440 = vmatpush.msra.mxu0 %v401_v36  ;;  %463 = vmatpush.msra.mxu1 %v402_v37  ;;  %v386_v56 = vld [vmem:[#allocation2 + $0x198] sm:$0xff]  ;;  %v387_v57 = vld [vmem:[#allocation2 + $0x1a0] sm:$0xff]  ;;  %v388_v58 = vld [vmem:[#allocation2 + $0x1a8] sm:$0xff] }
  0x31   : > { %486 = vmatpush.msra.mxu2 %v403_v38  ;;  %509 = vmatpush.msra.mxu3 %v350_v39  ;;  %v335_v59 = vld [vmem:[#allocation2 + $0x18] sm:$0xff]  ;;  %v383_v60 = vld [vmem:[#allocation2 + $0x180] sm:$0xff]  ;;  %v384_v61 = vld [vmem:[#allocation2 + $0x188] sm:$0xff] }
  0x32   : > { %441 = vmatpush.msra.mxu0 %v398_v40  ;;  %464 = vmatpush.msra.mxu1 %v399_v41  ;;  %v385_v62 = vld [vmem:[#allocation2 + $0x190] sm:$0xff]  ;;  %v332_v63 = vld [vmem:[#allocation2] sm:$0xff]  ;;  %v379_v1 = vld [vmem:[#allocation2 + $0x178] sm:$0xff] }
  0x33   : > { %487 = vmatpush.msra.mxu2 %v400_v42  ;;  %510 = vmatpush.msra.mxu3 %v347_v43  ;;  %v378_v0 = vld [vmem:[#allocation2 + $0x170] sm:$0xff]  ;;  %v617_v2 = vld [vmem:[#allocation2 + $0x468] sm:$0xff]  ;;  %v375_v4 = vld [vmem:[#allocation2 + $0x158] sm:$0xff] }
  0x34   : > { %442 = vmatpush.msra.mxu0 %v395_v44  ;;  %465 = vmatpush.msra.mxu1 %v396_v45  ;;  %v618_v3 = vld [vmem:[#allocation2 + $0x470] sm:$0xff]  ;;  %v376_v5 = vld [vmem:[#allocation2 + $0x160] sm:$0xff]  ;;  %v615_v7 = vld [vmem:[#allocation2 + $0x458] sm:$0xff] }
  0x35   : > { %488 = vmatpush.msra.mxu2 %v397_v46  ;;  %511 = vmatpush.msra.mxu3 %v344_v47  ;;  %v614_v6 = vld [vmem:[#allocation2 + $0x450] sm:$0xff]  ;;  %v372_v8 = vld [vmem:[#allocation2 + $0x140] sm:$0xff]  ;;  %v373_v9 = vld [vmem:[#allocation2 + $0x148] sm:$0xff] }
  0x36   : > { %443 = vmatpush.msra.mxu0 %v392_v48  ;;  %466 = vmatpush.msra.mxu1 %v393_v49  ;;  %v611_v10 = vld [vmem:[#allocation2 + $0x438] sm:$0xff]  ;;  %v612_v11 = vld [vmem:[#allocation2 + $0x440] sm:$0xff]  ;;  %v369_v12 = vld [vmem:[#allocation2 + $0x128] sm:$0xff] }
  0x37   : > { %489 = vmatpush.msra.mxu2 %v394_v50  ;;  %512 = vmatpush.msra.mxu3 %v341_v51  ;;  %v370_v13 = vld [vmem:[#allocation2 + $0x130] sm:$0xff]  ;;  %v608_v14 = vld [vmem:[#allocation2 + $0x420] sm:$0xff]  ;;  %v609_v15 = vld [vmem:[#allocation2 + $0x428] sm:$0xff] }
  0x38   : > { %444 = vmatpush.msra.mxu0 %v389_v52  ;;  %467 = vmatpush.msra.mxu1 %v390_v53  ;;  %v366_v16 = vld [vmem:[#allocation2 + $0x110] sm:$0xff]  ;;  %v367_v17 = vld [vmem:[#allocation2 + $0x118] sm:$0xff]  ;;  %v605_v18 = vld [vmem:[#allocation2 + $0x408] sm:$0xff] }
  0x39   : > { %490 = vmatpush.msra.mxu2 %v391_v54  ;;  %513 = vmatpush.msra.mxu3 %v338_v55  ;;  %v606_v19 = vld [vmem:[#allocation2 + $0x410] sm:$0xff]  ;;  %v363_v20 = vld [vmem:[#allocation2 + $0xf8] sm:$0xff]  ;;  %v364_v21 = vld [vmem:[#allocation2 + $0x100] sm:$0xff] }
  0x3a   : > { %445 = vmatpush.msra.mxu0 %v386_v56  ;;  %468 = vmatpush.msra.mxu1 %v387_v57  ;;  %v602_v22 = vld [vmem:[#allocation2 + $0x3f0] sm:$0xff]  ;;  %v603_v23 = vld [vmem:[#allocation2 + $0x3f8] sm:$0xff]  ;;  %v360_v24 = vld [vmem:[#allocation2 + $0xe0] sm:$0xff] }
  0x3b   : > { %491 = vmatpush.msra.mxu2 %v388_v58  ;;  %514 = vmatpush.msra.mxu3 %v335_v59  ;;  %v361_v25 = vld [vmem:[#allocation2 + $0xe8] sm:$0xff]  ;;  %v599_v26 = vld [vmem:[#allocation2 + $0x3d8] sm:$0xff]  ;;  %v600_v27 = vld [vmem:[#allocation2 + $0x3e0] sm:$0xff] }
  0x3c   : > { %446 = vmatpush.msra.mxu0 %v383_v60  ;;  %469 = vmatpush.msra.mxu1 %v384_v61  ;;  %v357_v28 = vld [vmem:[#allocation2 + $0xc8] sm:$0xff]  ;;  %v358_v29 = vld [vmem:[#allocation2 + $0xd0] sm:$0xff]  ;;  %v596_v30 = vld [vmem:[#allocation2 + $0x3c0] sm:$0xff] }
  0x3d   : > { %492 = vmatpush.msra.mxu2 %v385_v62  ;;  %515 = vmatpush.msra.mxu3 %v332_v63  ;;  %v597_v31 = vld [vmem:[#allocation2 + $0x3c8] sm:$0xff]  ;;  %v354_v33 = vld [vmem:[#allocation2 + $0xb0] sm:$0xff]  ;;  %v355_v34 = vld [vmem:[#allocation2 + $0xb8] sm:$0xff] }
  0x3e   : > { %523 = vmatpush.msrb.mxu0 %v378_v0  ;;  %546 = vmatpush.msrb.mxu1 %v379_v1  ;;  %v1815_v32 = vld [vmem:[%s1812_s12 + $0x1] sm:$0xff]  ;;  %v594_v36 = vld [vmem:[#allocation2 + $0x3b0] sm:$0xff]  ;;  %v351_v37 = vld [vmem:[#allocation2 + $0x98] sm:$0xff] }
  0x3f   : > { %620 = vmatpush.msrb.mxu2 %v617_v2  ;;  %643 = vmatpush.msrb.mxu3 %v618_v3  ;;  %v593_v35 = vld [vmem:[#allocation2 + $0x3a8] sm:$0xff]  ;;  %v352_v38 = vld [vmem:[#allocation2 + $0xa0] sm:$0xff]  ;;  %v590_v39 = vld [vmem:[#allocation2 + $0x390] sm:$0xff] }
  0x40   : > { %524 = vmatpush.msrb.mxu0 %v375_v4  ;;  %547 = vmatpush.msrb.mxu1 %v376_v5  ;;  %v591_v40 = vld [vmem:[#allocation2 + $0x398] sm:$0xff]  ;;  %v348_v41 = vld [vmem:[#allocation2 + $0x80] sm:$0xff]  ;;  %v349_v42 = vld [vmem:[#allocation2 + $0x88] sm:$0xff] }
  0x41   : > { %621 = vmatpush.msrb.mxu2 %v614_v6  ;;  %644 = vmatpush.msrb.mxu3 %v615_v7  ;;  %v587_v43 = vld [vmem:[#allocation2 + $0x378] sm:$0xff]  ;;  %v588_v44 = vld [vmem:[#allocation2 + $0x380] sm:$0xff]  ;;  %v345_v45 = vld [vmem:[#allocation2 + $0x68] sm:$0xff] }
  0x42   : > { %525 = vmatpush.msrb.mxu0 %v372_v8  ;;  %548 = vmatpush.msrb.mxu1 %v373_v9  ;;  %v346_v46 = vld [vmem:[#allocation2 + $0x70] sm:$0xff]  ;;  %v584_v47 = vld [vmem:[#allocation2 + $0x360] sm:$0xff]  ;;  %v585_v48 = vld [vmem:[#allocation2 + $0x368] sm:$0xff] }
  0x43   : > { %622 = vmatpush.msrb.mxu2 %v611_v10  ;;  %645 = vmatpush.msrb.mxu3 %v612_v11  ;;  %v1819_v49 = vld [vmem:[%s1812_s12 + $0x9] sm:$0xff]  ;;  %v343_v51 = vld [vmem:[#allocation2 + $0x58] sm:$0xff]  ;;  %v340_v55 = vld [vmem:[#allocation2 + $0x40] sm:$0xff] }
  0x44   : > { %526 = vmatpush.msrb.mxu0 %v369_v12  ;;  %549 = vmatpush.msrb.mxu1 %v370_v13  ;;  %v342_v50 = vld [vmem:[#allocation2 + $0x50] sm:$0xff]  ;;  %v581_v52 = vld [vmem:[#allocation2 + $0x348] sm:$0xff]  ;;  %v339_v54 = vld [vmem:[#allocation2 + $0x38] sm:$0xff] }
  0x45   : > { %623 = vmatpush.msrb.mxu2 %v608_v14  ;;  %646 = vmatpush.msrb.mxu3 %v609_v15  ;;  %v582_v53 = vld [vmem:[#allocation2 + $0x350] sm:$0xff]  ;;  %v579_v57 = vld [vmem:[#allocation2 + $0x338] sm:$0xff]  ;;  %v336_v58 = vld [vmem:[#allocation2 + $0x20] sm:$0xff] }
  0x46   : > { %527 = vmatpush.msrb.mxu0 %v366_v16  ;;  %550 = vmatpush.msrb.mxu1 %v367_v17  ;;  %v578_v56 = vld [vmem:[#allocation2 + $0x330] sm:$0xff]  ;;  %v337_v59 = vld [vmem:[#allocation2 + $0x28] sm:$0xff]  ;;  %v575_v60 = vld [vmem:[#allocation2 + $0x318] sm:$0xff] }
  0x47   : > { %624 = vmatpush.msrb.mxu2 %v605_v18  ;;  %647 = vmatpush.msrb.mxu3 %v606_v19  ;;  %v576_v61 = vld [vmem:[#allocation2 + $0x320] sm:$0xff]  ;;  %v333_v63 = vld [vmem:[#allocation2 + $0x8] sm:$0xff]  ;;  %v334_v0 = vld [vmem:[#allocation2 + $0x10] sm:$0xff] }
  0x48   : > { %528 = vmatpush.msrb.mxu0 %v363_v20  ;;  %551 = vmatpush.msrb.mxu1 %v364_v21  ;;  %v1823_v62 = vld [vmem:[%s1812_s12] sm:$0xff]  ;;  %v573_v2 = vld [vmem:[#allocation2 + $0x308] sm:$0xff]  ;;  %v619_v4 = vld [vmem:[#allocation2 + $0x478] sm:$0xff] }
  0x49   : > { %625 = vmatpush.msrb.mxu2 %v602_v22  ;;  %648 = vmatpush.msrb.mxu3 %v603_v23  ;;  %v572_v1 = vld [vmem:[#allocation2 + $0x300] sm:$0xff]  ;;  %v743_v5 = vld [vmem:[#allocation2 + $0x5e8] sm:$0xff]  ;;  %v744_v6 = vld [vmem:[#allocation2 + $0x5f0] sm:$0xff] }
  0x4a   : > { %529 = vmatpush.msrb.mxu0 %v360_v24  ;;  %552 = vmatpush.msrb.mxu1 %v361_v25  ;;  %v1828_v3 = vld [vmem:[%s1812_s12 + $0x2] sm:$0xff]  ;;  %v745_v7 = vld [vmem:[#allocation2 + $0x5f8] sm:$0xff]  ;;  %v740_v9 = vld [vmem:[#allocation2 + $0x5d0] sm:$0xff] }
  0x4b   : > { %626 = vmatpush.msrb.mxu2 %v599_v26  ;;  %649 = vmatpush.msrb.mxu3 %v600_v27  ;;  %v616_v8 = vld [vmem:[#allocation2 + $0x460] sm:$0xff]  ;;  %v741_v10 = vld [vmem:[#allocation2 + $0x5d8] sm:$0xff]  ;;  %v613_v12 = vld [vmem:[#allocation2 + $0x448] sm:$0xff] }
  0x4c   : > { %530 = vmatpush.msrb.mxu0 %v357_v28  ;;  %553 = vmatpush.msrb.mxu1 %v358_v29  ;;  %v742_v11 = vld [vmem:[#allocation2 + $0x5e0] sm:$0xff]  ;;  %v737_v13 = vld [vmem:[#allocation2 + $0x5b8] sm:$0xff]  ;;  %v739_v15 = vld [vmem:[#allocation2 + $0x5c8] sm:$0xff] }
  0x4d   : > { %627 = vmatpush.msrb.mxu2 %v596_v30  ;;  %650 = vmatpush.msrb.mxu3 %v597_v31  ;;  %v738_v14 = vld [vmem:[#allocation2 + $0x5c0] sm:$0xff]  ;;  %v610_v16 = vld [vmem:[#allocation2 + $0x430] sm:$0xff]  ;;  %v735_v18 = vld [vmem:[#allocation2 + $0x5a8] sm:$0xff] }
  0x4e   : > { %493 = vmatmul.f32.vlgmr.msra.gmra.mxu2 %v1815_v32  ;;  %531 = vmatpush.msrb.mxu0 %v354_v33  ;;  %v734_v17 = vld [vmem:[#allocation2 + $0x5a0] sm:$0xff]  ;;  %v736_v19 = vld [vmem:[#allocation2 + $0x5b0] sm:$0xff]  ;;  %v607_v20 = vld [vmem:[#allocation2 + $0x418] sm:$0xff] }
  0x4f   : > { %554 = vmatpush.msrb.mxu1 %v355_v34  ;;  %628 = vmatpush.msrb.mxu2 %v593_v35  ;;  %v731_v21 = vld [vmem:[#allocation2 + $0x588] sm:$0xff]  ;;  %v732_v22 = vld [vmem:[#allocation2 + $0x590] sm:$0xff]  ;;  %v733_v23 = vld [vmem:[#allocation2 + $0x598] sm:$0xff] }
  0x50   : > { %651 = vmatpush.msrb.mxu3 %v594_v36  ;;  %532 = vmatpush.msrb.mxu0 %v351_v37  ;;  %v604_v24 = vld [vmem:[#allocation2 + $0x400] sm:$0xff]  ;;  %v728_v25 = vld [vmem:[#allocation2 + $0x570] sm:$0xff]  ;;  %v729_v26 = vld [vmem:[#allocation2 + $0x578] sm:$0xff] }
  0x51   : > { %555 = vmatpush.msrb.mxu1 %v352_v38  ;;  %629 = vmatpush.msrb.mxu2 %v590_v39  ;;  %v730_v27 = vld [vmem:[#allocation2 + $0x580] sm:$0xff]  ;;  %v601_v28 = vld [vmem:[#allocation2 + $0x3e8] sm:$0xff]  ;;  %v725_v29 = vld [vmem:[#allocation2 + $0x558] sm:$0xff] }
  0x52   : > { %652 = vmatpush.msrb.mxu3 %v591_v40  ;;  %533 = vmatpush.msrb.mxu0 %v348_v41  ;;  %v726_v30 = vld [vmem:[#allocation2 + $0x560] sm:$0xff]  ;;  %v727_v31 = vld [vmem:[#allocation2 + $0x568] sm:$0xff]  ;;  %v724_v35 = vld [vmem:[#allocation2 + $0x550] sm:$0xff] }
  0x53   : > { %556 = vmatpush.msrb.mxu1 %v349_v42  ;;  %630 = vmatpush.msrb.mxu2 %v587_v43  ;;  %v722_v33 = vld [vmem:[#allocation2 + $0x540] sm:$0xff]  ;;  %v723_v34 = vld [vmem:[#allocation2 + $0x548] sm:$0xff]  ;;  %v595_v36 = vld [vmem:[#allocation2 + $0x3b8] sm:$0xff] }
  0x54   : > { %653 = vmatpush.msrb.mxu3 %v588_v44  ;;  %534 = vmatpush.msrb.mxu0 %v345_v45  ;;  %v719_v37 = vld [vmem:[#allocation2 + $0x528] sm:$0xff]  ;;  %v720_v38 = vld [vmem:[#allocation2 + $0x530] sm:$0xff]  ;;  %v721_v39 = vld [vmem:[#allocation2 + $0x538] sm:$0xff] }
  0x55   : > { %557 = vmatpush.msrb.mxu1 %v346_v46  ;;  %631 = vmatpush.msrb.mxu2 %v584_v47  ;;  %v592_v40 = vld [vmem:[#allocation2 + $0x3a0] sm:$0xff]  ;;  %v716_v41 = vld [vmem:[#allocation2 + $0x510] sm:$0xff]  ;;  %v717_v42 = vld [vmem:[#allocation2 + $0x518] sm:$0xff] }
  0x56   : > { %654 = vmatpush.msrb.mxu3 %v585_v48  ;;  %496 = vmatmul.f32.gmra.mxu2 %v1819_v49  ;;  %v718_v43 = vld [vmem:[#allocation2 + $0x520] sm:$0xff]  ;;  %v589_v44 = vld [vmem:[#allocation2 + $0x388] sm:$0xff]  ;;  %v713_v45 = vld [vmem:[#allocation2 + $0x4f8] sm:$0xff] }
  0x57   : > { %535 = vmatpush.msrb.mxu0 %v342_v50  ;;  %558 = vmatpush.msrb.mxu1 %v343_v51  ;;  %v714_v46 = vld [vmem:[#allocation2 + $0x500] sm:$0xff]  ;;  %v715_v47 = vld [vmem:[#allocation2 + $0x508] sm:$0xff]  ;;  %v586_v50 = vld [vmem:[#allocation2 + $0x370] sm:$0xff] }
  0x58   : > { %632 = vmatpush.msrb.mxu2 %v581_v52  ;;  %655 = vmatpush.msrb.mxu3 %v582_v53  ;;  %v1835_v48 = vld [vmem:[%s1812_s12 + $0x8] sm:$0xff]  ;;  %v710_v51 = vld [vmem:[#allocation2 + $0x4e0] sm:$0xff]  ;;  %v712_v53 = vld [vmem:[#allocation2 + $0x4f0] sm:$0xff] }
  0x59   : > { %536 = vmatpush.msrb.mxu0 %v339_v54  ;;  %559 = vmatpush.msrb.mxu1 %v340_v55  ;;  %v711_v52 = vld [vmem:[#allocation2 + $0x4e8] sm:$0xff]  ;;  %v583_v55 = vld [vmem:[#allocation2 + $0x358] sm:$0xff] }
  0x5a   : > { %633 = vmatpush.msrb.mxu2 %v578_v56  ;;  %656 = vmatpush.msrb.mxu3 %v579_v57  ;;  %v1840_v54 = vld [vmem:[%s1812_s12 + $0xa] sm:$0xff] }
  0x5b   : > { %537 = vmatpush.msrb.mxu0 %v336_v58  ;;  %560 = vmatpush.msrb.mxu1 %v337_v59  ;;  %v707_v56 = vld [vmem:[#allocation2 + $0x4c8] sm:$0xff]  ;;  %v708_v57 = vld [vmem:[#allocation2 + $0x4d0] sm:$0xff]  ;;  %v709_v58 = vld [vmem:[#allocation2 + $0x4d8] sm:$0xff] }
  0x5c   : > { %634 = vmatpush.msrb.mxu2 %v575_v60  ;;  %657 = vmatpush.msrb.mxu3 %v576_v61  ;;  %v580_v59 = vld [vmem:[#allocation2 + $0x340] sm:$0xff]  ;;  %v704_v60 = vld [vmem:[#allocation2 + $0x4b0] sm:$0xff]  ;;  %v705_v61 = vld [vmem:[#allocation2 + $0x4b8] sm:$0xff] }
  0x5d   : > { %516 = vmatmul.f32.vlgmr.msra.gmra.mxu3 %v1823_v62  ;;  %470 = vmatmul.f32.vlgmr.msra.gmra.mxu1 %v1815_v32 }
  0x5e   : > { %538 = vmatpush.msrb.mxu0 %v333_v63  ;;  %561 = vmatpush.msrb.mxu1 %v334_v0  ;;  %v577_v63 = vld [vmem:[#allocation2 + $0x328] sm:$0xff]  ;;  %v701_v0 = vld [vmem:[#allocation2 + $0x498] sm:$0xff] }
  0x5f   : > { %635 = vmatpush.msrb.mxu2 %v572_v1  ;;  %658 = vmatpush.msrb.mxu3 %v573_v2  ;;  %v702_v1 = vld [vmem:[#allocation2 + $0x4a0] sm:$0xff]  ;;  %v703_v2 = vld [vmem:[#allocation2 + $0x4a8] sm:$0xff] }
  0x60   : > { %447 = vmatmul.f32.vlgmr.msra.gmra.mxu0 %v1815_v32  ;;  %636 = vmatmul.f32.vlgmr.msrb.gmra.mxu2 %v1828_v3  ;;  %v598_v32 = vld [vmem:[#allocation2 + $0x3d0] sm:$0xff] }
  0x61   : > { %666 = vmatpush.msra.mxu0 %v619_v4  ;;  %746 = vmatpush.msra.mxu1 %v743_v5  ;;  %v574_v4 = vld [vmem:[#allocation2 + $0x310] sm:$0xff]  ;;  %v698_v5 = vld [vmem:[#allocation2 + $0x480] sm:$0xff] }
  0x62   : > { %769 = vmatpush.msra.mxu2 %v744_v6  ;;  %792 = vmatpush.msra.mxu3 %v745_v7  ;;  %v699_v6 = vld [vmem:[#allocation2 + $0x488] sm:$0xff]  ;;  %v700_v7 = vld [vmem:[#allocation2 + $0x490] sm:$0xff] }
  0x63   : > { %667 = vmatpush.msra.mxu0 %v616_v8  ;;  %747 = vmatpush.msra.mxu1 %v740_v9  ;;  %v1847_v8 = vld [vmem:[%s1812_s12 + $0x3] sm:$0xff] }
  0x64   : > { %770 = vmatpush.msra.mxu2 %v741_v10  ;;  %793 = vmatpush.msra.mxu3 %v742_v11  ;;  %v869_v9 = vld [vmem:[#allocation2 + $0x768] sm:$0xff]  ;;  %v870_v10 = vld [vmem:[#allocation2 + $0x770] sm:$0xff]  ;;  %v871_v11 = vld [vmem:[#allocation2 + $0x778] sm:$0xff] }
  0x65   : > { %668 = vmatpush.msra.mxu0 %v613_v12  ;;  %748 = vmatpush.msra.mxu1 %v737_v13  ;;  %v995_v12 = vld [vmem:[#allocation2 + $0x8e8] sm:$0xff]  ;;  %v866_v13 = vld [vmem:[#allocation2 + $0x750] sm:$0xff] }
  0x66   : > { %771 = vmatpush.msra.mxu2 %v738_v14  ;;  %794 = vmatpush.msra.mxu3 %v739_v15  ;;  %v867_v14 = vld [vmem:[#allocation2 + $0x758] sm:$0xff]  ;;  %v868_v15 = vld [vmem:[#allocation2 + $0x760] sm:$0xff] }
  0x67   : > { %669 = vmatpush.msra.mxu0 %v610_v16  ;;  %749 = vmatpush.msra.mxu1 %v734_v17  ;;  %v863_v16 = vld [vmem:[#allocation2 + $0x738] sm:$0xff]  ;;  %v864_v17 = vld [vmem:[#allocation2 + $0x740] sm:$0xff] }
  0x68   : > { %772 = vmatpush.msra.mxu2 %v735_v18  ;;  %795 = vmatpush.msra.mxu3 %v736_v19  ;;  %v865_v18 = vld [vmem:[#allocation2 + $0x748] sm:$0xff]  ;;  %v989_v19 = vld [vmem:[#allocation2 + $0x8b8] sm:$0xff] }
  0x69   : > { %473 = vmatmul.f32.gmra.mxu1 %v1819_v49  ;;  %670 = vmatpush.msra.mxu0 %v607_v20  ;;  %v860_v20 = vld [vmem:[#allocation2 + $0x720] sm:$0xff] }
  0x6a   : > { %750 = vmatpush.msra.mxu1 %v731_v21  ;;  %773 = vmatpush.msra.mxu2 %v732_v22  ;;  %v861_v21 = vld [vmem:[#allocation2 + $0x728] sm:$0xff]  ;;  %v862_v22 = vld [vmem:[#allocation2 + $0x730] sm:$0xff] }
  0x6b   : > { %796 = vmatpush.msra.mxu3 %v733_v23  ;;  %671 = vmatpush.msra.mxu0 %v604_v24  ;;  %v986_v23 = vld [vmem:[#allocation2 + $0x8a0] sm:$0xff]  ;;  %v1852_v24 = vld [vmem:[%s1812_s12 + $0xb] sm:$0xff] }
  0x6c   : > { %751 = vmatpush.msra.mxu1 %v728_v25  ;;  %774 = vmatpush.msra.mxu2 %v729_v26  ;;  %v857_v25 = vld [vmem:[#allocation2 + $0x708] sm:$0xff]  ;;  %v858_v26 = vld [vmem:[#allocation2 + $0x710] sm:$0xff] }
  0x6d   : > { %797 = vmatpush.msra.mxu3 %v730_v27  ;;  %672 = vmatpush.msra.mxu0 %v601_v28  ;;  %v859_v27 = vld [vmem:[#allocation2 + $0x718] sm:$0xff]  ;;  %v983_v28 = vld [vmem:[#allocation2 + $0x888] sm:$0xff] }
  0x6e   : > { %752 = vmatpush.msra.mxu1 %v725_v29  ;;  %775 = vmatpush.msra.mxu2 %v726_v30  ;;  %v854_v29 = vld [vmem:[#allocation2 + $0x6f0] sm:$0xff]  ;;  %v855_v30 = vld [vmem:[#allocation2 + $0x6f8] sm:$0xff] }
  0x6f   : > { %798 = vmatpush.msra.mxu3 %v727_v31  ;;  %673 = vmatpush.msra.mxu0 %v598_v32  ;;  %v856_v31 = vld [vmem:[#allocation2 + $0x700] sm:$0xff]  ;;  %v980_v32 = vld [vmem:[#allocation2 + $0x870] sm:$0xff] }
  0x70   : > { %753 = vmatpush.msra.mxu1 %v722_v33  ;;  %776 = vmatpush.msra.mxu2 %v723_v34  ;;  %v851_v33 = vld [vmem:[#allocation2 + $0x6d8] sm:$0xff]  ;;  %v852_v34 = vld [vmem:[#allocation2 + $0x6e0] sm:$0xff] }
  0x71   : > { %799 = vmatpush.msra.mxu3 %v724_v35  ;;  %562 = vmatmul.f32.vlgmr.msrb.gmra.mxu1 %v1823_v62  ;;  %v853_v35 = vld [vmem:[#allocation2 + $0x6e8] sm:$0xff] }
  0x72   : > { %674 = vmatpush.msra.mxu0 %v595_v36  ;;  %754 = vmatpush.msra.mxu1 %v719_v37  ;;  %v977_v36 = vld [vmem:[#allocation2 + $0x858] sm:$0xff]  ;;  %v848_v37 = vld [vmem:[#allocation2 + $0x6c0] sm:$0xff] }
  0x73   : > { %777 = vmatpush.msra.mxu2 %v720_v38  ;;  %800 = vmatpush.msra.mxu3 %v721_v39  ;;  %v849_v38 = vld [vmem:[#allocation2 + $0x6c8] sm:$0xff]  ;;  %v850_v39 = vld [vmem:[#allocation2 + $0x6d0] sm:$0xff] }
  0x74   : > { %675 = vmatpush.msra.mxu0 %v592_v40  ;;  %755 = vmatpush.msra.mxu1 %v716_v41  ;;  %v974_v40 = vld [vmem:[#allocation2 + $0x840] sm:$0xff]  ;;  %v845_v41 = vld [vmem:[#allocation2 + $0x6a8] sm:$0xff] }
  0x75   : > { %778 = vmatpush.msra.mxu2 %v717_v42  ;;  %801 = vmatpush.msra.mxu3 %v718_v43  ;;  %v846_v42 = vld [vmem:[#allocation2 + $0x6b0] sm:$0xff]  ;;  %v847_v43 = vld [vmem:[#allocation2 + $0x6b8] sm:$0xff] }
  0x76   : > { %676 = vmatpush.msra.mxu0 %v589_v44  ;;  %756 = vmatpush.msra.mxu1 %v713_v45  ;;  %v971_v44 = vld [vmem:[#allocation2 + $0x828] sm:$0xff]  ;;  %v842_v45 = vld [vmem:[#allocation2 + $0x690] sm:$0xff] }
  0x77   : > { %779 = vmatpush.msra.mxu2 %v714_v46  ;;  %802 = vmatpush.msra.mxu3 %v715_v47  ;;  %v843_v46 = vld [vmem:[#allocation2 + $0x698] sm:$0xff]  ;;  %v844_v47 = vld [vmem:[#allocation2 + $0x6a0] sm:$0xff] }
  0x78   : > { %519 = vmatmul.f32.gmra.mxu3 %v1835_v48  ;;  %450 = vmatmul.f32.gmra.mxu0 %v1819_v49  ;;  %v706_v49 = vld [vmem:[#allocation2 + $0x4c0] sm:$0xff] }
  0x79   : > { %677 = vmatpush.msra.mxu0 %v586_v50  ;;  %757 = vmatpush.msra.mxu1 %v710_v51  ;;  %v839_v50 = vld [vmem:[#allocation2 + $0x678] sm:$0xff]  ;;  %v840_v51 = vld [vmem:[#allocation2 + $0x680] sm:$0xff] }
  0x7a   : > { %780 = vmatpush.msra.mxu2 %v711_v52  ;;  %803 = vmatpush.msra.mxu3 %v712_v53  ;;  %v841_v52 = vld [vmem:[#allocation2 + $0x688] sm:$0xff]  ;;  %v965_v53 = vld [vmem:[#allocation2 + $0x7f8] sm:$0xff] }
  0x7b   : > { %565 = vmatmul.f32.gmra.mxu1 %v1835_v48  ;;  %639 = vmatmul.f32.gmra.mxu2 %v1840_v54 }
  0x7c   : > { %678 = vmatpush.msra.mxu0 %v583_v55  ;;  %758 = vmatpush.msra.mxu1 %v707_v56  ;;  %v837_v55 = vld [vmem:[#allocation2 + $0x668] sm:$0xff]  ;;  %v838_v56 = vld [vmem:[#allocation2 + $0x670] sm:$0xff] }
  0x7d   : > { %781 = vmatpush.msra.mxu2 %v708_v57  ;;  %804 = vmatpush.msra.mxu3 %v709_v58  ;;  %v962_v57 = vld [vmem:[#allocation2 + $0x7e0] sm:$0xff]  ;;  %v833_v58 = vld [vmem:[#allocation2 + $0x648] sm:$0xff] }
  0x7e   : > { %679 = vmatpush.msra.mxu0 %v580_v59  ;;  %759 = vmatpush.msra.mxu1 %v704_v60  ;;  %v834_v59 = vld [vmem:[#allocation2 + $0x650] sm:$0xff]  ;;  %v835_v60 = vld [vmem:[#allocation2 + $0x658] sm:$0xff] }
  0x7f   : > { %782 = vmatpush.msra.mxu2 %v705_v61  ;;  %805 = vmatpush.msra.mxu3 %v706_v49  ;;  %v959_v61 = vld [vmem:[#allocation2 + $0x7c8] sm:$0xff]  ;;  %v830_v49 = vld [vmem:[#allocation2 + $0x630] sm:$0xff] }
  0x80   : > { %680 = vmatpush.msra.mxu0 %v577_v63  ;;  %760 = vmatpush.msra.mxu1 %v701_v0  ;;  %v831_v63 = vld [vmem:[#allocation2 + $0x638] sm:$0xff]  ;;  %v832_v0 = vld [vmem:[#allocation2 + $0x640] sm:$0xff] }
  0x81   : > { %783 = vmatpush.msra.mxu2 %v702_v1  ;;  %806 = vmatpush.msra.mxu3 %v703_v2  ;;  %v956_v1 = vld [vmem:[#allocation2 + $0x7b0] sm:$0xff]  ;;  %v827_v2 = vld [vmem:[#allocation2 + $0x618] sm:$0xff] }
  0x82   : > { %659 = vmatmul.f32.vlgmr.msrb.gmra.mxu3 %v1828_v3  ;;  %539 = vmatmul.f32.vlgmr.msrb.gmra.mxu0 %v1823_v62  ;;  %v992_v62 = vld [vmem:[#allocation2 + $0x8d0] sm:$0xff] }
  0x83   : > { %681 = vmatpush.msra.mxu0 %v574_v4  ;;  %761 = vmatpush.msra.mxu1 %v698_v5  ;;  %v828_v4 = vld [vmem:[#allocation2 + $0x620] sm:$0xff]  ;;  %v829_v5 = vld [vmem:[#allocation2 + $0x628] sm:$0xff] }
  0x84   : > { %784 = vmatpush.msra.mxu2 %v699_v6  ;;  %807 = vmatpush.msra.mxu3 %v700_v7  ;;  %v953_v6 = vld [vmem:[#allocation2 + $0x798] sm:$0xff]  ;;  %v825_v7 = vld [vmem:[#allocation2 + $0x608] sm:$0xff] }
  0x85   : > { %762 = vmatmul.f32.vlgmr.msra.gmra.mxu1 %v1847_v8  ;;  %785 = vmatmul.f32.vlgmr.msra.gmra.mxu2 %v1847_v8 }
  0x86   : > { %872 = vmatpush.msrb.mxu0 %v869_v9  ;;  %895 = vmatpush.msrb.mxu1 %v870_v10  ;;  %v950_v9 = vld [vmem:[#allocation2 + $0x780] sm:$0xff] }
  0x87   : > { %918 = vmatpush.msrb.mxu2 %v871_v11  ;;  %998 = vmatpush.msrb.mxu3 %v995_v12  ;;  %v821_v10 = vld [vmem:[%s1812_s12 + $0x4] sm:$0xff]  ;;  %v996_v12 = vld [vmem:[#allocation2 + $0x8f0] sm:$0xff] }
  0x88   : > { %873 = vmatpush.msrb.mxu0 %v866_v13  ;;  %896 = vmatpush.msrb.mxu1 %v867_v14  ;;  %v1864_v11 = vld [vmem:[%s1812_s12 + $0x5] sm:$0xff]  ;;  %v997_v13 = vld [vmem:[#allocation2 + $0x8f8] sm:$0xff] }
  0x89   : > { %919 = vmatpush.msrb.mxu2 %v868_v15  ;;  %999 = vmatpush.msrb.mxu3 %v992_v62  ;;  %v1121_v14 = vld [vmem:[#allocation2 + $0xa68] sm:$0xff]  ;;  %v1122_v15 = vld [vmem:[#allocation2 + $0xa70] sm:$0xff]  ;;  %v993_v62 = vld [vmem:[#allocation2 + $0x8d8] sm:$0xff] }
  0x8a   : > { %874 = vmatpush.msrb.mxu0 %v863_v16  ;;  %897 = vmatpush.msrb.mxu1 %v864_v17  ;;  %v994_v16 = vld [vmem:[#allocation2 + $0x8e0] sm:$0xff]  ;;  %v1118_v17 = vld [vmem:[#allocation2 + $0xa50] sm:$0xff] }
  0x8b   : > { %920 = vmatpush.msrb.mxu2 %v865_v18  ;;  %1000 = vmatpush.msrb.mxu3 %v989_v19  ;;  %v1119_v18 = vld [vmem:[#allocation2 + $0xa58] sm:$0xff]  ;;  %v990_v19 = vld [vmem:[#allocation2 + $0x8c0] sm:$0xff] }
  0x8c   : > { %875 = vmatpush.msrb.mxu0 %v860_v20  ;;  %898 = vmatpush.msrb.mxu1 %v861_v21  ;;  %v991_v20 = vld [vmem:[#allocation2 + $0x8c8] sm:$0xff]  ;;  %v1115_v21 = vld [vmem:[#allocation2 + $0xa38] sm:$0xff] }
  0x8d   : > { %921 = vmatpush.msrb.mxu2 %v862_v22  ;;  %1001 = vmatpush.msrb.mxu3 %v986_v23  ;;  %v1116_v22 = vld [vmem:[#allocation2 + $0xa40] sm:$0xff]  ;;  %v987_v23 = vld [vmem:[#allocation2 + $0x8a8] sm:$0xff] }
  0x8e   : > { %542 = vmatmul.f32.gmra.mxu0 %v1835_v48  ;;  %662 = vmatmul.f32.gmra.mxu3 %v1840_v54  ;;  %v968_v48 = vld [vmem:[#allocation2 + $0x810] sm:$0xff] }
  0x8f   : > { %765 = vmatmul.f32.gmra.mxu1 %v1852_v24  ;;  %876 = vmatpush.msrb.mxu0 %v857_v25  ;;  %v1112_v25 = vld [vmem:[#allocation2 + $0xa20] sm:$0xff] }
  0x90   : > { %899 = vmatpush.msrb.mxu1 %v858_v26  ;;  %922 = vmatpush.msrb.mxu2 %v859_v27  ;;  %v1113_v26 = vld [vmem:[#allocation2 + $0xa28] sm:$0xff] }
  0x91   : > { %1002 = vmatpush.msrb.mxu3 %v983_v28  ;;  %877 = vmatpush.msrb.mxu0 %v854_v29  ;;  %v822_v27 = vld [vmem:[%s1812_s12 + $0xc] sm:$0xff] }
  0x92   : > { %900 = vmatpush.msrb.mxu1 %v855_v30  ;;  %923 = vmatpush.msrb.mxu2 %v856_v31  ;;  %v1869_v28 = vld [vmem:[%s1812_s12 + $0xd] sm:$0xff]  ;;  %v985_v30 = vld [vmem:[#allocation2 + $0x898] sm:$0xff] }
  0x93   : > { %1003 = vmatpush.msrb.mxu3 %v980_v32  ;;  %878 = vmatpush.msrb.mxu0 %v851_v33  ;;  %v984_v29 = vld [vmem:[#allocation2 + $0x890] sm:$0xff]  ;;  %v1109_v31 = vld [vmem:[#allocation2 + $0xa08] sm:$0xff]  ;;  %v981_v33 = vld [vmem:[#allocation2 + $0x878] sm:$0xff] }
  0x94   : > { %901 = vmatpush.msrb.mxu1 %v852_v34  ;;  %924 = vmatpush.msrb.mxu2 %v853_v35  ;;  %v1110_v32 = vld [vmem:[#allocation2 + $0xa10] sm:$0xff]  ;;  %v982_v34 = vld [vmem:[#allocation2 + $0x880] sm:$0xff] }
  0x95   : > { %1004 = vmatpush.msrb.mxu3 %v977_v36  ;;  %879 = vmatpush.msrb.mxu0 %v848_v37  ;;  %v1106_v35 = vld [vmem:[#allocation2 + $0x9f0] sm:$0xff]  ;;  %v1107_v36 = vld [vmem:[#allocation2 + $0x9f8] sm:$0xff]  ;;  %v978_v37 = vld [vmem:[#allocation2 + $0x860] sm:$0xff] }
  0x96   : > { %902 = vmatpush.msrb.mxu1 %v849_v38  ;;  %925 = vmatpush.msrb.mxu2 %v850_v39  ;;  %v979_v38 = vld [vmem:[#allocation2 + $0x868] sm:$0xff]  ;;  %v1103_v39 = vld [vmem:[#allocation2 + $0x9d8] sm:$0xff] }
  0x97   : > { %1005 = vmatpush.msrb.mxu3 %v974_v40  ;;  %682 = vmatmul.f32.vlgmr.msra.gmra.mxu0 %v1828_v3  ;;  %v836_v3 = vld [vmem:[#allocation2 + $0x660] sm:$0xff] }
  0x98   : > { %808 = vmatmul.f32.vlgmr.msra.gmra.mxu3 %v1847_v8  ;;  %880 = vmatpush.msrb.mxu0 %v845_v41  ;;  %v826_v8 = vld [vmem:[#allocation2 + $0x610] sm:$0xff]  ;;  %v1104_v40 = vld [vmem:[#allocation2 + $0x9e0] sm:$0xff]  ;;  %v975_v41 = vld [vmem:[#allocation2 + $0x848] sm:$0xff] }
  0x99   : > { %903 = vmatpush.msrb.mxu1 %v846_v42  ;;  %926 = vmatpush.msrb.mxu2 %v847_v43  ;;  %v976_v42 = vld [vmem:[#allocation2 + $0x850] sm:$0xff]  ;;  %v1100_v43 = vld [vmem:[#allocation2 + $0x9c0] sm:$0xff] }
  0x9a   : > { %1006 = vmatpush.msrb.mxu3 %v971_v44  ;;  %881 = vmatpush.msrb.mxu0 %v842_v45  ;;  %v1101_v44 = vld [vmem:[#allocation2 + $0x9c8] sm:$0xff]  ;;  %v972_v45 = vld [vmem:[#allocation2 + $0x830] sm:$0xff] }
  0x9b   : > { %904 = vmatpush.msrb.mxu1 %v843_v46  ;;  %927 = vmatpush.msrb.mxu2 %v844_v47  ;;  %v973_v46 = vld [vmem:[#allocation2 + $0x838] sm:$0xff]  ;;  %v1097_v47 = vld [vmem:[#allocation2 + $0x9a8] sm:$0xff] }
  0x9c   : > { %1007 = vmatpush.msrb.mxu3 %v968_v48  ;;  %882 = vmatpush.msrb.mxu0 %v839_v50  ;;  %v1098_v48 = vld [vmem:[#allocation2 + $0x9b0] sm:$0xff]  ;;  %v969_v50 = vld [vmem:[#allocation2 + $0x818] sm:$0xff] }
  0x9d   : > { %905 = vmatpush.msrb.mxu1 %v840_v51  ;;  %928 = vmatpush.msrb.mxu2 %v841_v52  ;;  %v970_v51 = vld [vmem:[#allocation2 + $0x820] sm:$0xff]  ;;  %v1094_v52 = vld [vmem:[#allocation2 + $0x990] sm:$0xff] }
  0x9e   : > { %1008 = vmatpush.msrb.mxu3 %v965_v53  ;;  %788 = vmatmul.f32.gmra.mxu2 %v1852_v24  ;;  %v1095_v53 = vld [vmem:[#allocation2 + $0x998] sm:$0xff] }
  0x9f   : > { %883 = vmatpush.msrb.mxu0 %v836_v3  ;;  %906 = vmatpush.msrb.mxu1 %v837_v55  ;;  %v966_v3 = vld [vmem:[#allocation2 + $0x800] sm:$0xff]  ;;  %v967_v55 = vld [vmem:[#allocation2 + $0x808] sm:$0xff] }
  0xa0   : > { %929 = vmatpush.msrb.mxu2 %v838_v56  ;;  %1009 = vmatpush.msrb.mxu3 %v962_v57  ;;  %v1091_v56 = vld [vmem:[#allocation2 + $0x978] sm:$0xff]  ;;  %v1092_v57 = vld [vmem:[#allocation2 + $0x980] sm:$0xff] }
  0xa1   : > { %685 = vmatmul.f32.gmra.mxu0 %v1840_v54  ;;  %811 = vmatmul.f32.gmra.mxu3 %v1852_v24  ;;  %v824_v54 = vld [vmem:[#allocation2 + $0x600] sm:$0xff]  ;;  %v988_v24 = vld [vmem:[#allocation2 + $0x8b0] sm:$0xff] }
  0xa2   : > { %884 = vmatpush.msrb.mxu0 %v833_v58  ;;  %907 = vmatpush.msrb.mxu1 %v834_v59  ;;  %v963_v58 = vld [vmem:[#allocation2 + $0x7e8] sm:$0xff]  ;;  %v964_v59 = vld [vmem:[#allocation2 + $0x7f0] sm:$0xff] }
  0xa3   : > { %930 = vmatpush.msrb.mxu2 %v835_v60  ;;  %1010 = vmatpush.msrb.mxu3 %v959_v61  ;;  %v1088_v60 = vld [vmem:[#allocation2 + $0x960] sm:$0xff]  ;;  %v1089_v61 = vld [vmem:[#allocation2 + $0x968] sm:$0xff] }
  0xa4   : > { %885 = vmatpush.msrb.mxu0 %v830_v49  ;;  %908 = vmatpush.msrb.mxu1 %v831_v63  ;;  %v960_v49 = vld [vmem:[#allocation2 + $0x7d0] sm:$0xff]  ;;  %v961_v63 = vld [vmem:[#allocation2 + $0x7d8] sm:$0xff] }
  0xa5   : > { %931 = vmatpush.msrb.mxu2 %v832_v0  ;;  %1011 = vmatpush.msrb.mxu3 %v956_v1  ;;  %v1085_v0 = vld [vmem:[#allocation2 + $0x948] sm:$0xff]  ;;  %v1086_v1 = vld [vmem:[#allocation2 + $0x950] sm:$0xff] }
  0xa6   : > { %886 = vmatpush.msrb.mxu0 %v827_v2  ;;  %909 = vmatpush.msrb.mxu1 %v828_v4  ;;  %v957_v2 = vld [vmem:[#allocation2 + $0x7b8] sm:$0xff]  ;;  %v958_v4 = vld [vmem:[#allocation2 + $0x7c0] sm:$0xff] }
  0xa7   : > { %932 = vmatpush.msrb.mxu2 %v829_v5  ;;  %1012 = vmatpush.msrb.mxu3 %v953_v6  ;;  %v1082_v5 = vld [vmem:[#allocation2 + $0x930] sm:$0xff]  ;;  %v1083_v6 = vld [vmem:[#allocation2 + $0x938] sm:$0xff] }
  0xa8   : > { %887 = vmatpush.msrb.mxu0 %v824_v54  ;;  %910 = vmatpush.msrb.mxu1 %v825_v7  ;;  %v954_v54 = vld [vmem:[#allocation2 + $0x7a0] sm:$0xff]  ;;  %v955_v7 = vld [vmem:[#allocation2 + $0x7a8] sm:$0xff] }
  0xa9   : > { %933 = vmatpush.msrb.mxu2 %v826_v8  ;;  %1013 = vmatpush.msrb.mxu3 %v950_v9  ;;  %v1079_v8 = vld [vmem:[#allocation2 + $0x918] sm:$0xff]  ;;  %v1080_v9 = vld [vmem:[#allocation2 + $0x920] sm:$0xff] }
  0xaa   : > { %888 = vmatmul.f32.vlgmr.msrb.gmra.mxu0 %v821_v10  ;;  %911 = vmatmul.f32.vlgmr.msrb.gmra.mxu1 %v821_v10 }
  0xab   : > { %934 = vmatmul.f32.vlgmr.msrb.gmra.mxu2 %v821_v10  ;;  %1014 = vmatmul.f32.vlgmr.msrb.gmra.mxu3 %v1864_v11  ;;  %v951_v10 = vld [vmem:[#allocation2 + $0x788] sm:$0xff] }
  0xac   : > { %1021 = vmatpush.msra.mxu0 %v996_v12  ;;  %1044 = vmatpush.msra.mxu1 %v997_v13  ;;  %v952_v12 = vld [vmem:[#allocation2 + $0x790] sm:$0xff]  ;;  %v1076_v13 = vld [vmem:[#allocation2 + $0x900] sm:$0xff] }
  0xad   : > { %1124 = vmatpush.msra.mxu2 %v1121_v14  ;;  %1147 = vmatpush.msra.mxu3 %v1122_v15  ;;  %v1077_v14 = vld [vmem:[#allocation2 + $0x908] sm:$0xff] }
  0xae   : > { %1022 = vmatpush.msra.mxu0 %v993_v62  ;;  %1045 = vmatpush.msra.mxu1 %v994_v16  ;;  %v1873_v15 = vld [vmem:[%s1812_s12 + $0x6] sm:$0xff]  ;;  %v1123_v62 = vld [vmem:[#allocation2 + $0xa78] sm:$0xff] }
  0xaf   : > { %1125 = vmatpush.msra.mxu2 %v1118_v17  ;;  %1148 = vmatpush.msra.mxu3 %v1119_v18  ;;  %v1120_v16 = vld [vmem:[#allocation2 + $0xa60] sm:$0xff]  ;;  %v1117_v17 = vld [vmem:[#allocation2 + $0xa48] sm:$0xff] }
  0xb0   : > { %1023 = vmatpush.msra.mxu0 %v990_v19  ;;  %1046 = vmatpush.msra.mxu1 %v991_v20  ;;  %v1114_v19 = vld [vmem:[#allocation2 + $0xa30] sm:$0xff] }
  0xb1   : > { %1126 = vmatpush.msra.mxu2 %v1115_v21  ;;  %1149 = vmatpush.msra.mxu3 %v1116_v22  ;;  %v1074_v20 = vld [vmem:[%s1812_s12 + $0xe] sm:$0xff]  ;;  %v1111_v21 = vld [vmem:[#allocation2 + $0xa18] sm:$0xff] }
  0xb2   : > { %1024 = vmatpush.msra.mxu0 %v987_v23  ;;  %1047 = vmatpush.msra.mxu1 %v988_v24  ;;  %v1105_v23 = vld [vmem:[#allocation2 + $0x9e8] sm:$0xff]  ;;  %v1102_v24 = vld [vmem:[#allocation2 + $0x9d0] sm:$0xff] }
  0xb3   : > { %1127 = vmatpush.msra.mxu2 %v1112_v25  ;;  %1150 = vmatpush.msra.mxu3 %v1113_v26  ;;  %v1099_v26 = vld [vmem:[#allocation2 + $0x9b8] sm:$0xff] }
  0xb4   : > { %891 = vmatmul.f32.gmra.mxu0 %v822_v27  ;;  %914 = vmatmul.f32.gmra.mxu1 %v822_v27 }
  0xb5   : > { %937 = vmatmul.f32.gmra.mxu2 %v822_v27  ;;  %1017 = vmatmul.f32.gmra.mxu3 %v1869_v28 }
  0xb6   : > { %1025 = vmatpush.msra.mxu0 %v984_v29  ;;  %1048 = vmatpush.msra.mxu1 %v985_v30  ;;  %v1096_v29 = vld [vmem:[#allocation2 + $0x9a0] sm:$0xff] }
  0xb7   : > { %1128 = vmatpush.msra.mxu2 %v1109_v31  ;;  %1151 = vmatpush.msra.mxu3 %v1110_v32  ;;  %v1093_v31 = vld [vmem:[#allocation2 + $0x988] sm:$0xff] }
  0xb8   : > { %1026 = vmatpush.msra.mxu0 %v981_v33  ;;  %1049 = vmatpush.msra.mxu1 %v982_v34  ;;  %v1090_v33 = vld [vmem:[#allocation2 + $0x970] sm:$0xff] }
  0xb9   : > { %1129 = vmatpush.msra.mxu2 %v1106_v35  ;;  %1152 = vmatpush.msra.mxu3 %v1107_v36  ;;  %v1087_v35 = vld [vmem:[#allocation2 + $0x958] sm:$0xff] }
  0xba   : > { %1027 = vmatpush.msra.mxu0 %v978_v37  ;;  %1050 = vmatpush.msra.mxu1 %v979_v38  ;;  %v1084_v37 = vld [vmem:[#allocation2 + $0x940] sm:$0xff]  ;;  %v1081_v38 = vld [vmem:[#allocation2 + $0x928] sm:$0xff] }
  0xbb   : > { %1130 = vmatpush.msra.mxu2 %v1103_v39  ;;  %1153 = vmatpush.msra.mxu3 %v1104_v40  ;;  %v1078_v39 = vld [vmem:[#allocation2 + $0x910] sm:$0xff] }
  0xbc   : > { %1028 = vmatpush.msra.mxu0 %v975_v41  ;;  %1051 = vmatpush.msra.mxu1 %v976_v42 }
  0xbd   : > { %1131 = vmatpush.msra.mxu2 %v1100_v43  ;;  %1154 = vmatpush.msra.mxu3 %v1101_v44 }
  0xbe   : > { %1029 = vmatpush.msra.mxu0 %v972_v45  ;;  %1052 = vmatpush.msra.mxu1 %v973_v46 }
  0xbf   : > { %1132 = vmatpush.msra.mxu2 %v1097_v47  ;;  %1155 = vmatpush.msra.mxu3 %v1098_v48 }
  0xc0   : > { %1030 = vmatpush.msra.mxu0 %v969_v50  ;;  %1053 = vmatpush.msra.mxu1 %v970_v51 }
  0xc1   : > { %1133 = vmatpush.msra.mxu2 %v1094_v52  ;;  %1156 = vmatpush.msra.mxu3 %v1095_v53 }
  0xc2   : > { %1031 = vmatpush.msra.mxu0 %v966_v3  ;;  %1054 = vmatpush.msra.mxu1 %v967_v55 }
  0xc3   : > { %1134 = vmatpush.msra.mxu2 %v1091_v56  ;;  %1157 = vmatpush.msra.mxu3 %v1092_v57 }
  0xc4   : > { %1032 = vmatpush.msra.mxu0 %v963_v58  ;;  %1055 = vmatpush.msra.mxu1 %v964_v59  ;;  %v1244_v58 = vld [vmem:[#allocation7 + $0x78] sm:$0xff] }
  0xc5   : > { %1135 = vmatpush.msra.mxu2 %v1088_v60  ;;  %1158 = vmatpush.msra.mxu3 %v1089_v61  ;;  %v1243_v61 = vld [vmem:[#allocation7 + $0x70] sm:$0xff] }
  0xc6   : > { %1033 = vmatpush.msra.mxu0 %v960_v49  ;;  %1056 = vmatpush.msra.mxu1 %v961_v63  ;;  %v1242_v49 = vld [vmem:[#allocation7 + $0x68] sm:$0xff] }
  0xc7   : > { %1136 = vmatpush.msra.mxu2 %v1085_v0  ;;  %1159 = vmatpush.msra.mxu3 %v1086_v1  ;;  %v1241_v0 = vld [vmem:[#allocation7 + $0x60] sm:$0xff] }
  0xc8   : > { %1034 = vmatpush.msra.mxu0 %v957_v2  ;;  %1057 = vmatpush.msra.mxu1 %v958_v4  ;;  %v1240_v4 = vld [vmem:[#allocation7 + $0x58] sm:$0xff] }
  0xc9   : > { %1137 = vmatpush.msra.mxu2 %v1082_v5  ;;  %1160 = vmatpush.msra.mxu3 %v1083_v6 }
  0xca   : > { %1035 = vmatpush.msra.mxu0 %v954_v54  ;;  %1058 = vmatpush.msra.mxu1 %v955_v7  ;;  %v1239_v54 = vld [vmem:[#allocation7 + $0x50] sm:$0xff]  ;;  %v1238_v7 = vld [vmem:[#allocation7 + $0x48] sm:$0xff] }
  0xcb   : > { %1138 = vmatpush.msra.mxu2 %v1079_v8  ;;  %1161 = vmatpush.msra.mxu3 %v1080_v9  ;;  %v1237_v8 = vld [vmem:[#allocation7 + $0x40] sm:$0xff] }
  0xcc   : > { %1036 = vmatpush.msra.mxu0 %v951_v10  ;;  %1059 = vmatpush.msra.mxu1 %v952_v12 }
  0xcd   : > { %1139 = vmatpush.msra.mxu2 %v1076_v13  ;;  %1162 = vmatpush.msra.mxu3 %v1077_v14  ;;  %v1236_v13 = vld [vmem:[#allocation7 + $0x38] sm:$0xff] }
  0xce   : > { %1037 = vmatmul.f32.vlgmr.msra.gmra.mxu0 %v1864_v11  ;;  %1060 = vmatmul.f32.vlgmr.msra.gmra.mxu1 %v1864_v11  ;;  %v1108_v11 = vld [vmem:[#allocation2 + $0xa00] sm:$0xff] }
  0xcf   : > { %1140 = vmatmul.f32.vlgmr.msra.gmra.mxu2 %v1873_v15  ;;  %1163 = vmatmul.f32.vlgmr.msra.gmra.mxu3 %v1873_v15 }
  0xd0   : > { %1170 = vmatpush.msrb.mxu0 %v1123_v62  ;;  %1437 = vmatpush.msrb.mxu3 %v1123_v62  ;;  %v1235_v62 = vld [vmem:[#allocation7 + $0x30] sm:$0xff] }
  0xd1   : > { %v494_v18 = vpop.f32.mrf.mxu2  ;;  %1249 = vmatpush.msrb.mxu1 %v1244_v58  ;;  %1274 = vmatpush.msrb.mxu2 %v1244_v58 }
  0xd2   : > { %1171 = vmatpush.msrb.mxu0 %v1120_v16  ;;  %1438 = vmatpush.msrb.mxu3 %v1120_v16  ;;  %v1234_v16 = vld [vmem:[#allocation7 + $0x28] sm:$0xff] }
  0xd3   : > { %1250 = vmatpush.msrb.mxu1 %v1243_v61  ;;  %1275 = vmatpush.msrb.mxu2 %v1243_v61 }
  0xd4   : > { %1172 = vmatpush.msrb.mxu0 %v1117_v17  ;;  %1439 = vmatpush.msrb.mxu3 %v1117_v17 }
  0xd5   : > { %1251 = vmatpush.msrb.mxu1 %v1242_v49  ;;  %1276 = vmatpush.msrb.mxu2 %v1242_v49 }
  0xd6   : > { %1173 = vmatpush.msrb.mxu0 %v1114_v19  ;;  %1440 = vmatpush.msrb.mxu3 %v1114_v19  ;;  %v1233_v19 = vld [vmem:[#allocation7 + $0x20] sm:$0xff] }
  0xd7   : > { %1040 = vmatmul.f32.gmra.mxu0 %v1869_v28  ;;  %1063 = vmatmul.f32.gmra.mxu1 %v1869_v28 }
  0xd8   : > { %1143 = vmatmul.f32.gmra.mxu2 %v1074_v20  ;;  %1166 = vmatmul.f32.gmra.mxu3 %v1074_v20 }
  0xd9   : > { %1174 = vmatpush.msrb.mxu0 %v1111_v21  ;;  %1441 = vmatpush.msrb.mxu3 %v1111_v21  ;;  %v497_v22 = vpop.f32.mrf.mxu2 }
  0xda   : > { %v1882_v25 = vpop.f32.mrf.mxu1  ;;  %1252 = vmatpush.msrb.mxu1 %v1241_v0  ;;  %1277 = vmatpush.msrb.mxu2 %v1241_v0 }
  0xdb   : > { %1175 = vmatpush.msrb.mxu0 %v1108_v11  ;;  %1442 = vmatpush.msrb.mxu3 %v1108_v11 }
  0xdc   : > { %1253 = vmatpush.msrb.mxu1 %v1240_v4  ;;  %1278 = vmatpush.msrb.mxu2 %v1240_v4 }
  0xdd   : > { %1176 = vmatpush.msrb.mxu0 %v1105_v23  ;;  %1443 = vmatpush.msrb.mxu3 %v1105_v23  ;;  %v448_v27 = vpop.f32.mrf.mxu0  ;;  %v1232_v23 = vld [vmem:[#allocation7 + $0x18] sm:$0xff] }
  0xde   : > { %1254 = vmatpush.msrb.mxu1 %v1239_v54  ;;  %1279 = vmatpush.msrb.mxu2 %v1239_v54 }
  0xdf   : > { %1177 = vmatpush.msrb.mxu0 %v1102_v24  ;;  %1444 = vmatpush.msrb.mxu3 %v1102_v24  ;;  %v1231_v24 = vld [vmem:[#allocation7 + $0x10] sm:$0xff] }
  0xe0   : > { %v517_v28 = vpop.f32.mrf.mxu3  ;;  %1255 = vmatpush.msrb.mxu1 %v1238_v7  ;;  %1280 = vmatpush.msrb.mxu2 %v1238_v7 }
  0xe1   : > { %1178 = vmatpush.msrb.mxu0 %v1099_v26  ;;  %1445 = vmatpush.msrb.mxu3 %v1099_v26  ;;  %v518_v30 = vadd.f32 %v517_v28, %v448_v27  ;;  %v1230_v26 = vld [vmem:[#allocation7 + $0x8] sm:$0xff]  ;;  %v1229_v27 = vld [vmem:[#allocation7] sm:$0xff] }
  0xe2   : > { %1256 = vmatpush.msrb.mxu1 %v1237_v8  ;;  %1281 = vmatpush.msrb.mxu2 %v1237_v8 }
  0xe3   : > { %1179 = vmatpush.msrb.mxu0 %v1096_v29  ;;  %1446 = vmatpush.msrb.mxu3 %v1096_v29  ;;  %v637_v32 = vpop.f32.mrf.mxu2 }
  0xe4   : > { %v689_v34 = vadd.f32 %v637_v32, %v518_v30  ;;  %1257 = vmatpush.msrb.mxu1 %v1236_v13  ;;  %1282 = vmatpush.msrb.mxu2 %v1236_v13 }
  0xe5   : > { %1180 = vmatpush.msrb.mxu0 %v1093_v31  ;;  %1447 = vmatpush.msrb.mxu3 %v1093_v31 }
  0xe6   : > { %v1884_v36 = vpop.f32.mrf.mxu1  ;;  %1258 = vmatpush.msrb.mxu1 %v1235_v62  ;;  %1283 = vmatpush.msrb.mxu2 %v1235_v62 }
  0xe7   : > { %1181 = vmatpush.msrb.mxu0 %v1090_v33  ;;  %1448 = vmatpush.msrb.mxu3 %v1090_v33 }
  0xe8   : > { %1259 = vmatpush.msrb.mxu1 %v1234_v16  ;;  %1284 = vmatpush.msrb.mxu2 %v1234_v16 }
  0xe9   : > { %1182 = vmatpush.msrb.mxu0 %v1087_v35  ;;  %1449 = vmatpush.msrb.mxu3 %v1087_v35 }
  0xea   : > { %1260 = vmatpush.msrb.mxu1 %v1233_v19  ;;  %1285 = vmatpush.msrb.mxu2 %v1233_v19 }
  0xeb   : > { %1183 = vmatpush.msrb.mxu0 %v1084_v37  ;;  %1450 = vmatpush.msrb.mxu3 %v1084_v37 }
  0xec   : > { %1261 = vmatpush.msrb.mxu1 %v1232_v23  ;;  %1286 = vmatpush.msrb.mxu2 %v1232_v23 }
  0xed   : > { %1184 = vmatpush.msrb.mxu0 %v1081_v38  ;;  %1451 = vmatpush.msrb.mxu3 %v1081_v38 }
  0xee   : > { %v563_v40 = vpop.f32.mrf.mxu1  ;;  %1262 = vmatpush.msrb.mxu1 %v1231_v24  ;;  %1287 = vmatpush.msrb.mxu2 %v1231_v24 }
  0xef   : > { %1185 = vmatpush.msrb.mxu0 %v1078_v39  ;;  %1452 = vmatpush.msrb.mxu3 %v1078_v39  ;;  %v564_v41 = vadd.f32 %v563_v40, %v494_v18 }
  0xf0   : > { %1186 = vmatmul.f32.vlgmr.msrb.gmra.mxu0 %v1873_v15  ;;  %1189 = vmatmul.f32.vlgmr.msrb.gmra.mxu3 %v1074_v20 }
  0xf1   : > { %1263 = vmatpush.msrb.mxu1 %v1230_v26  ;;  %1288 = vmatpush.msrb.mxu2 %v1230_v26 }
  0xf3   : > { %1264 = vmatpush.msrb.mxu1 %v1229_v27  ;;  %1289 = vmatpush.msrb.mxu2 %v1229_v27 }
  0xf5   : > { %v451_v42 = vpop.f32.mrf.mxu0 }
  0xf8   : > { %v566_v43 = vpop.f32.mrf.mxu1 }
  0xf9   : > { %v567_v44 = vadd.f32 %v566_v43, %v497_v22 }
  0xfb   : > { %v520_v45 = vpop.f32.mrf.mxu3 }
  0xfc   : > { %v521_v46 = vadd.f32 %v520_v45, %v451_v42  ;;  %v1199_v42 = vld [vmem:[#allocation4] sm:$0x7] }
  0xfd   : > { %v1203_v54 = vperm.slane %v1199_v42, 2 }
  0xfe   : > { %v640_v47 = vpop.f32.mrf.mxu2 }
  0xff   : > { %v692_v48 = vadd.f32 %v640_v47, %v521_v46  ;;  %v1887_v50 = vpop.f32.mrf.mxu0  ;;  %v1201_v46 = vperm.slane %v1199_v42, 0  ;;  %v1202_v47 = vperm.slane %v1199_v42, 1 }
 0x102   : > { %v763_v51 = vpop.f32.mrf.mxu1 }
 0x103   : > { %v815_v52 = vadd.f32 %v763_v51, %v689_v34  ;;  %v541_v34 = vadd.f32 %v1887_v50, %v1882_v25 }
 0x105   : > { %v1889_v53 = vpop.f32.mrf.mxu3 }
 0x106   : > { %v690_v35 = vadd.f32 %v1889_v53, %v541_v34 }
 0x108   : > { %v1895_v1 = vpop.f32.mrf.mxu2 }
 0x109   : > { %v816_v39 = vadd.f32 %v1895_v1, %v690_v35 }
 0x10b   : > { %v1891_v3 = vpop.f32.mrf.mxu0 }
 0x10c   : > { %v766_v55 = vpop.f32.mrf.mxu1 }
 0x10d   : > { %v818_v56 = vadd.f32 %v766_v55, %v692_v48 }
 0x111   : > { %v1893_v57 = vpop.f32.mrf.mxu3 }
 0x114   : > { %v683_v59 = vpop.f32.mrf.mxu0 }
 0x115   : > { %v691_v60 = vadd.f32 %v683_v59, %v564_v41  ;;  %v544_v41 = vadd.f32 %v1891_v3, %v1884_v36 }
 0x117   : > { %v693_v48 = vadd.f32 %v1893_v57, %v544_v41 }
 0x11b   : > { %v809_v63 = vpop.f32.mrf.mxu3 }
 0x11c   : > { %v817_v2 = vadd.f32 %v809_v63, %v691_v60 }
 0x11e   : > { %v686_v5 = vpop.f32.mrf.mxu0 }
 0x11f   : > { %v694_v6 = vadd.f32 %v686_v5, %v567_v44  ;;  %v1213_v44 = vld [vmem:[#allocation6] sm:$0x7] }
 0x120   : > { %v1216_v55 = vperm.slane %v1213_v44, 1 }
 0x121   : > { %v1897_v9 = vpop.f32.mrf.mxu2 }
 0x122   : > { %v819_v59 = vadd.f32 %v1897_v9, %v693_v48 }
 0x124   : > { %v812_v10 = vpop.f32.mrf.mxu3 }
 0x125   : > { %v820_v12 = vadd.f32 %v812_v10, %v694_v6  ;;  %v1217_v10 = vperm.slane %v1213_v44, 2 }
 0x127   : > { %v889_v14 = vpop.f32.mrf.mxu0  ;;  %v912_v30 = vpop.f32.mrf.mxu1 }
 0x128   : > { %v941_v15 = vadd.f32 %v889_v14, %v815_v52  ;;  %v942_v43 = vadd.f32 %v912_v30, %v816_v39  ;;  %v1215_v52 = vperm.slane %v1213_v44, 0 }
 0x12e   : > { %v935_v17 = vpop.f32.mrf.mxu2  ;;  %v1015_v18 = vpop.f32.mrf.mxu3 }
 0x12f   : > { %v943_v20 = vadd.f32 %v935_v17, %v817_v2  ;;  %v1067_v21 = vadd.f32 %v1015_v18, %v941_v15  ;;  %v1517_v18 = vld [vmem:[#allocation9] ss:$0 sm:$0xff] }
 0x131   : > { %v892_v11 = vpop.f32.mrf.mxu0  ;;  %v915_v33 = vpop.f32.mrf.mxu1 }
 0x132   : > { %v944_v22 = vadd.f32 %v892_v11, %v818_v56  ;;  %v945_v61 = vadd.f32 %v915_v33, %v819_v59 }
 0x138   : > { %v938_v29 = vpop.f32.mrf.mxu2  ;;  %v1018_v28 = vpop.f32.mrf.mxu3 }
 0x139   : > { %v946_v31 = vadd.f32 %v938_v29, %v820_v12  ;;  %v1070_v32 = vadd.f32 %v1018_v28, %v944_v22 }
 0x14b   : > { %v1061_v37 = vpop.f32.mrf.mxu1  ;;  %v1038_v40 = vpop.f32.mrf.mxu0 }
 0x14c   : > { %v1069_v38 = vadd.f32 %v1061_v37, %v943_v20  ;;  %v1068_v45 = vadd.f32 %v1038_v40, %v942_v43 }
 0x152   : > { %v1141_v51 = vpop.f32.mrf.mxu2  ;;  %v1164_v25 = vpop.f32.mrf.mxu3 }
 0x153   : > { %v1193_v50 = vadd.f32 %v1141_v51, %v1067_v21  ;;  %v1194_v53 = vadd.f32 %v1164_v25, %v1068_v45 }
 0x154   : > { %v1041_v3 = vpop.f32.mrf.mxu0  ;;  %v1064_v9 = vpop.f32.mrf.mxu1 }
 0x155   : > { %v1207_v56 = vmul.f32 %v1201_v46, %v1193_v50  ;;  %v1208_v58 = vmul.f32 %v1202_v47, %v1194_v53  ;;  %v1071_v49 = vadd.f32 %v1041_v3, %v945_v61  ;;  %v1072_v13 = vadd.f32 %v1064_v9, %v946_v31 }
 0x157   : > { %v1221_v60 = vadd.f32 %v1215_v52, %v1207_v56  ;;  %v1222_v36 = vadd.f32 %v1216_v55, %v1208_v58 }
 0x159   : > { %1265 = vmatmul.f32.vlgmr.msrb.gmra.mxu1 %v1222_v36  ;;  %v1227_v20 = vmax.f32 %v1221_v60, 0.0 }
 0x15b   : > { %v1144_v63 = vpop.f32.mrf.mxu2  ;;  %v1167_v0 = vpop.f32.mrf.mxu3 }
 0x15c   : > { %v1196_v1 = vadd.f32 %v1144_v63, %v1070_v32  ;;  %v1197_v57 = vadd.f32 %v1167_v0, %v1071_v49 }
 0x15e   : > { %v1210_v2 = vmul.f32 %v1201_v46, %v1196_v1  ;;  %v1211_v4 = vmul.f32 %v1202_v47, %v1197_v57 }
 0x160   : > { %v1225_v5 = vadd.f32 %v1216_v55, %v1211_v4  ;;  %v1224_v6 = vadd.f32 %v1215_v52, %v1210_v2 }
 0x162   : > { %1268 = vmatmul.f32.gmra.mxu1 %v1225_v5  ;;  %v1228_v24 = vmax.f32 %v1224_v6, 0.0 }
 0x16d   : > { %v1187_v7 = vpop.f32.mrf.mxu0 }
 0x16e   : > { %v1195_v8 = vadd.f32 %v1187_v7, %v1069_v38 }
 0x170   : > { %v1209_v12 = vmul.f32 %v1203_v54, %v1195_v8 }
 0x172   : > { %v1223_v14 = vadd.f32 %v1217_v10, %v1209_v12 }
 0x173   : > { %v1190_v15 = vpop.f32.mrf.mxu3 }
 0x174   : > { %v1198_v62 = vadd.f32 %v1190_v15, %v1072_v13 }
 0x176   : > { %v1212_v16 = vmul.f32 %v1203_v54, %v1198_v62 }
 0x178   : > { %v1226_v17 = vadd.f32 %v1217_v10, %v1212_v16 }
 0x1d6   : > { %v1266_v19 = vpop.f32.mrf.mxu1 }
 0x1d7   : > { %v1267_v21 = vadd.f32 %v1517_v18, %v1266_v19 }
 0x1d9   : > { %v1272_v11 = vmul.f32 %v1267_v21, %v1227_v20 }
 0x1db   : > { %1290 = vmatmul.f32.vlgmr.msrb.gmra.mxu2 %v1272_v11 }
 0x1df   : > { %v1269_v22 = vpop.f32.mrf.mxu1 }
 0x1e0   : > { %v1270_v23 = vadd.f32 %v1517_v18, %v1269_v22 }
 0x1e2   : > { %v1273_v26 = vmul.f32 %v1270_v23, %v1228_v24 }
 0x1e4   : > { %1293 = vmatmul.f32.gmra.mxu2 %v1273_v26 }
 0x25e   : > { %v1291_v27 = vpop.f32.mrf.mxu2 }
 0x25f   : > { %v1292_v29 = vadd.f32 %v1517_v18, %v1291_v27 }
 0x261   : > { %v1297_v28 = vsub.f32 0.0, %v1292_v29 }
 0x263   : > { %v1299_v30 = vmul.f32 1.442695, %v1297_v28 }
 0x265   : > { %1518 = vpow2.f32 %v1299_v30 }
 0x267   : > { %v1294_v31 = vpop.f32.mrf.mxu2 }
 0x268   : > { %v1295_v32 = vadd.f32 %v1517_v18, %v1294_v31 }
 0x26a   : > { %v1298_v33 = vsub.f32 0.0, %v1295_v32 }
 0x26b   : > { %v1519_v34 = vpop.eup %1518 }
 0x26c   : > { %v1303_v35 = vadd.f32 1.0, %v1519_v34  ;;  %v1301_v37 = vmul.f32 1.442695, %v1298_v33 }
 0x26e   : > { %1520 = vrcp.f32 %v1303_v35 }
 0x26f   : > { %1522 = vpow2.f32 %v1301_v37 }
 0x274   : > { %v1521_v38 = vpop.eup %1520 }
 0x275   : > { %v1523_v39 = vpop.eup %1522  ;;  %v1307_v40 = vmul.f32 %v1521_v38, %v1223_v14 }
 0x276   : > { %v1304_v41 = vadd.f32 1.0, %v1523_v39 }
 0x277   : > { %1309 = vst [vmem:[%s328_s17] sm:$0xff] %v1307_v40 }
 0x278   : > { %1524 = vrcp.f32 %v1304_v41 }
 0x27e   : > { %v1525_v42 = vpop.eup %1524 }
 0x27f   : > { %v1308_v43 = vmul.f32 %v1525_v42, %v1226_v17 }
 0x281   : > { %1310 = vst [vmem:[%s328_s17 + $0x8] sm:$0xff] %v1308_v43 }
 0x282 PF: > { %s19_s21 = sadd.s32 1, %s1694_s21  }
 0x283   : > { %p16_p8 = scmp.ge.s32.totalorder %s19_s21, 4  }
 0x285   :  { %18 = sbr.rel (!%p16_p8) target bundleno = 3 (0x3), region = 101 }
 0x28a   :  { %1333 = vsyncpa [#allocation3], 1 }
 0x28b   :  { %1335 = vsyncpa [#allocation3 + $0x1], 1 }
 0x28c   :  { %1336 = vsyncpa [#allocation5], 1 }
 0x28d   :  { %1337 = vsyncpa [#allocation8], 1 }

</bundles_post_ra>
